<compile_context>
chip_gen: v5e
topology: v5e:2x2
jax: 0.10.0
libtpu: 0.0.40
codegen_flags: <defaults>
</compile_context>

<pallas_src>
import jax
import jax.numpy as jnp
import numpy as np
from jax.experimental import pallas as pl
from jax.experimental.pallas import tpu as pltpu

EPS = 1e-5
NEG_SLOPE = 0.2


def _leaky_relu(x, slope):
    return jnp.where(x > 0, x, slope * x)


def discriminator_kernel(x_ref, w1_ref, b1_ref, w2_ref, b2_ref,
                         w3_ref, b3_ref, o_ref):
    # In-kernel bf16 cast (free VPU work under the MXU) -- no wrapper cast pass.
    x = x_ref[...].astype(jnp.bfloat16)                                  # [TB, 784]

    # ---- block1: (Linear + folded eval-BN) -> LeakyReLU ----
    h1 = jnp.dot(x, w1_ref[...], preferred_element_type=jnp.float32)    # [TB, 256] f32
    h1 = _leaky_relu(h1 + b1_ref[...], NEG_SLOPE)

    # ---- block2: (Linear + folded eval-BN) -> LeakyReLU ----
    h2 = jnp.dot(h1.astype(jnp.bfloat16), w2_ref[...],
                 preferred_element_type=jnp.float32)                    # [TB, 128] f32
    h2 = _leaky_relu(h2 + b2_ref[...], NEG_SLOPE)

    # ---- block3: Linear(128,1) -> Dropout(eval: identity) -> Sigmoid ----
    # Degenerate N=1 matmul done as VPU multiply + XLU lane reduction instead
    # of an MXU op (frees the MXU push slot, avoids a masked result drain).
    logits = jnp.sum(h2 * w3_ref[...], axis=-1, keepdims=True)          # [TB, 1] f32
    o_ref[...] = jax.nn.sigmoid(logits + b3_ref[...])


def _resident_spec(a):
    """Full-array block with a constant block index -> fetched once, stays in VMEM."""
    return pl.BlockSpec(a.shape, lambda i: (0, 0))


def _choose_tb(B):
    """Pick the batch tile.

    Priorities (perf review):
      * tb divides B (no pad-row waste; v5e is near MXU-bound here),
      * even grid length >= 2 when possible (v7x has 2 TensorCores),
      * as large as possible up to 1024 (amortize per-step overhead, fill MXU M).
    VMEM never binds: resident weights ~0.5 MB + double-buffered x tiles at
    tb=1024 (~6 MB) stay far under the scoped-VMEM default on every chip.
    """
    MAX_TB = 1024
    if B <= MAX_TB:
        half = B // 2
        if B % 2 == 0 and half % 8 == 0 and half > 0:
            return half          # grid = 2 -> both v7x TCs busy, zero padding
        return B                 # single full-batch tile (always layout-legal)
    best = None
    for tb in range(MAX_TB, 255, -8):
        if B % tb == 0:
            if (B // tb) % 2 == 0:
                return tb        # even grid, no padding
            if best is None:
                best = tb        # divides B, odd grid
    # Fall back to a fixed tile; Pallas masks the partial trailing block
    # (OOB input rows never reach valid output rows -- rows are independent).
    return best if best is not None else 512


def discriminator_forward(x, prepared, *, tb=None):
    """x: [B, 784] float32.  prepared: dict from prepare_params()."""
    B = x.shape[0]
    if tb is None:
        tb = _choose_tb(B)
    n_tiles = pl.cdiv(B, tb)

    inputs = (
        x,                                   # f32, streamed + cast in-kernel
        prepared["w1"], prepared["b1"],
        prepared["w2"], prepared["b2"],
        prepared["w3"], prepared["b3"],
    )

    in_specs = [pl.BlockSpec((tb, 784), lambda i: (i, 0))]
    in_specs += [_resident_spec(a) for a in inputs[1:]]

    weight_bytes = (784 * 256 + 256 * 128) * 2 + (256 + 128 + 128 + 1) * 4
    cost = pl.CostEstimate(
        flops=2 * B * (784 * 256 + 256 * 128 + 128),
        transcendentals=B,                                  # sigmoid exp
        bytes_accessed=B * 784 * 4 + weight_bytes + B * 4,
    )

    out = pl.pallas_call(
        discriminator_kernel,
        out_shape=jax.ShapeDtypeStruct((B, 1), jnp.float32),
        grid=(n_tiles,),
        in_specs=in_specs,
        out_specs=pl.BlockSpec((tb, 1), lambda i: (i, 0)),
        compiler_params=pltpu.CompilerParams(
            dimension_semantics=("parallel",),
        ),
        cost_estimate=cost,
    )(*inputs)

    return out


def init_params(key):
    """Deterministic parameter init (shapes match the PyTorch module)."""
    ks = jax.random.split(key, 14)

    def linear(kw, kb, fan_in, fan_out):
        bound = 1.0 / np.sqrt(fan_in)
        # PyTorch Linear stores [out, in]; transpose to [in, out] for x @ W.
        w = jax.random.uniform(kw, (fan_out, fan_in), jnp.float32, -bound, bound).T
        b = jax.random.uniform(kb, (1, fan_out), jnp.float32, -bound, bound)
        return w, b

    w1, b1 = linear(ks[0], ks[1], 784, 256)
    w2, b2 = linear(ks[2], ks[3], 256, 128)
    w3, b3 = linear(ks[4], ks[5], 128, 1)

    def bn(kg, kb, km, kv, f):
        g = 1.0 + 0.1 * jax.random.normal(kg, (1, f), jnp.float32)
        be = 0.1 * jax.random.normal(kb, (1, f), jnp.float32)
        rm = 0.1 * jax.random.normal(km, (1, f), jnp.float32)
        rv = 1.0 + 0.1 * jax.random.uniform(kv, (1, f), jnp.float32)
        return g, be, rm, rv

    g1, be1, rm1, rv1 = bn(ks[6], ks[7], ks[8], ks[9], 256)
    g2, be2, rm2, rv2 = bn(ks[10], ks[11], ks[12], ks[13], 128)

    return dict(
        w1=w1, b1=b1, g1=g1, be1=be1, rm1=rm1, rv1=rv1,
        w2=w2, b2=b2, g2=g2, be2=be2, rm2=rm2, rv2=rv2,
        w3=w3, b3=b3,
    )


def prepare_params(p):
    """Fold eval-mode BatchNorm into the preceding Linear; cast MXU weights to bf16."""
    def fold(w, b, g, be, rm, rv):
        scale = g * jax.lax.rsqrt(rv + EPS)          # [1, F]
        w_f = w * scale                              # per-output-column scale
        b_f = (b - rm) * scale + be
        return w_f.astype(jnp.bfloat16), b_f.astype(jnp.float32)

    w1, b1 = fold(p["w1"], p["b1"], p["g1"], p["be1"], p["rm1"], p["rv1"])
    w2, b2 = fold(p["w2"], p["b2"], p["g2"], p["be2"], p["rm2"], p["rv2"])
    # Final layer is evaluated on the VPU (multiply + lane reduce), so keep it
    # f32 and store the weight as a [1, 128] row for broadcast against h2.
    w3_row = p["w3"].T.astype(jnp.float32)           # [1, 128]
    return dict(
        w1=w1, b1=b1,
        w2=w2, b2=b2,
        w3=w3_row, b3=p["b3"].astype(jnp.float32),
    )


def reference_forward(x, p):
    """Pure-JAX f32 reference (un-folded BN math) for correctness checking."""
    h1 = x @ p["w1"] + p["b1"]
    h1 = (h1 - p["rm1"]) * (p["g1"] / jnp.sqrt(p["rv1"] + EPS)) + p["be1"]
    h1 = jnp.where(h1 > 0, h1, NEG_SLOPE * h1)
    h2 = h1 @ p["w2"] + p["b2"]
    h2 = (h2 - p["rm2"]) * (p["g2"] / jnp.sqrt(p["rv2"] + EPS)) + p["be2"]
    h2 = jnp.where(h2 > 0, h2, NEG_SLOPE * h2)
    return jax.nn.sigmoid(h2 @ p["w3"] + p["b3"])


if __name__ == "__main__":
    key = jax.random.PRNGKey(0)
    kx, kp = jax.random.split(key)

    # Small batch: _choose_tb picks tb=128 -> grid=(2,) (even, multi-step, no padding).
    B = 256
    x = jax.random.normal(kx, (B, 784), jnp.float32)
    params = init_params(kp)
    prepared = prepare_params(params)

    fwd = jax.jit(discriminator_forward)
    out = jax.block_until_ready(fwd(x, prepared))

    ref = reference_forward(x, params)
    assert out.shape == (B, 1), out.shape
    # bf16 matmul inputs with f32 accumulation vs f32 reference -> loose tol.
    np.testing.assert_allclose(np.asarray(out), np.asarray(ref),
                               rtol=2e-2, atol=1.5e-2)
    print("KERNEL_OK")
</pallas_src>

<mosaic_0001>
module attributes {stable_mosaic.version = 11 : i64} {
  func.func @discriminator_kernel(%arg0: i32, %arg1: memref<128x784xf32, #tpu.memory_space<vmem>>, %arg2: memref<784x256xbf16, #tpu.memory_space<vmem>>, %arg3: memref<1x256xf32, #tpu.memory_space<vmem>>, %arg4: memref<256x128xbf16, #tpu.memory_space<vmem>>, %arg5: memref<1x128xf32, #tpu.memory_space<vmem>>, %arg6: memref<1x128xf32, #tpu.memory_space<vmem>>, %arg7: memref<1x1xf32, #tpu.memory_space<vmem>>, %arg8: memref<128x1xf32, #tpu.memory_space<vmem>>) attributes {dimension_semantics = [#tpu.dimension_semantics<parallel>], iteration_bounds = array<i64: 2>, scalar_prefetch = 0 : i64, scratch_operands = 0 : i64, tpu.core_type = #tpu.core_type<tc>, window_params = [{transform_indices = @transform_0, window_bounds = array<i64: 128, 784>}, {pipeline_mode = #tpu.pipeline_mode<synchronous>, transform_indices = @transform_1, window_bounds = array<i64: 784, 256>}, {pipeline_mode = #tpu.pipeline_mode<synchronous>, transform_indices = @transform_2, window_bounds = array<i64: 1, 256>}, {pipeline_mode = #tpu.pipeline_mode<synchronous>, transform_indices = @transform_3, window_bounds = array<i64: 256, 128>}, {pipeline_mode = #tpu.pipeline_mode<synchronous>, transform_indices = @transform_4, window_bounds = array<i64: 1, 128>}, {pipeline_mode = #tpu.pipeline_mode<synchronous>, transform_indices = @transform_5, window_bounds = array<i64: 1, 128>}, {pipeline_mode = #tpu.pipeline_mode<synchronous>, transform_indices = @transform_6, window_bounds = array<i64: 1, 1>}, {transform_indices = @transform_7, window_bounds = array<i64: 128, 1>}]} {
    %c0 = arith.constant 0 : index
    %c0_0 = arith.constant 0 : index
    %0 = vector.load %arg1[%c0, %c0_0] : memref<128x784xf32, #tpu.memory_space<vmem>>, vector<128x784xf32>
    %1 = arith.truncf %0 : vector<128x784xf32> to vector<128x784xbf16>
    %c0_1 = arith.constant 0 : index
    %c0_2 = arith.constant 0 : index
    %2 = vector.load %arg2[%c0_1, %c0_2] : memref<784x256xbf16, #tpu.memory_space<vmem>>, vector<784x256xbf16>
    %cst = arith.constant dense<0.000000e+00> : vector<128x256xf32>
    %3 = tpu.matmul %1, %2, %cst {dimension_numbers = #tpu.dot_dimension_numbers<[1], [0], [0], [1], [0, 0, 1, 1], [], []>} : vector<128x784xbf16>, vector<784x256xbf16>, vector<128x256xf32> -> vector<128x256xf32>
    %c0_3 = arith.constant 0 : index
    %c0_4 = arith.constant 0 : index
    %4 = vector.load %arg3[%c0_3, %c0_4] : memref<1x256xf32, #tpu.memory_space<vmem>>, vector<1x256xf32>
    %5 = vector.broadcast %4 : vector<1x256xf32> to vector<128x256xf32>
    %6 = arith.addf %3, %5 : vector<128x256xf32>
    %cst_5 = arith.constant 0.000000e+00 : f32
    %7 = vector.broadcast %cst_5 : f32 to vector<128x256xf32>
    %8 = arith.cmpf ogt, %6, %7 : vector<128x256xf32>
    %cst_6 = arith.constant 2.000000e-01 : f32
    %9 = vector.broadcast %cst_6 : f32 to vector<128x256xf32>
    %10 = arith.mulf %9, %6 : vector<128x256xf32>
    %11 = arith.select %8, %6, %10 : vector<128x256xi1>, vector<128x256xf32>
    %12 = arith.truncf %11 : vector<128x256xf32> to vector<128x256xbf16>
    %c0_7 = arith.constant 0 : index
    %c0_8 = arith.constant 0 : index
    %13 = vector.load %arg4[%c0_7, %c0_8] : memref<256x128xbf16, #tpu.memory_space<vmem>>, vector<256x128xbf16>
    %cst_9 = arith.constant dense<0.000000e+00> : vector<128x128xf32>
    %14 = tpu.matmul %12, %13, %cst_9 {dimension_numbers = #tpu.dot_dimension_numbers<[1], [0], [0], [1], [0, 0, 1, 1], [], []>} : vector<128x256xbf16>, vector<256x128xbf16>, vector<128x128xf32> -> vector<128x128xf32>
    %c0_10 = arith.constant 0 : index
    %c0_11 = arith.constant 0 : index
    %15 = vector.load %arg5[%c0_10, %c0_11] : memref<1x128xf32, #tpu.memory_space<vmem>>, vector<1x128xf32>
    %16 = vector.broadcast %15 : vector<1x128xf32> to vector<128x128xf32>
    %17 = arith.addf %14, %16 : vector<128x128xf32>
    %cst_12 = arith.constant 0.000000e+00 : f32
    %18 = vector.broadcast %cst_12 : f32 to vector<128x128xf32>
    %19 = arith.cmpf ogt, %17, %18 : vector<128x128xf32>
    %cst_13 = arith.constant 2.000000e-01 : f32
    %20 = vector.broadcast %cst_13 : f32 to vector<128x128xf32>
    %21 = arith.mulf %20, %17 : vector<128x128xf32>
    %22 = arith.select %19, %17, %21 : vector<128x128xi1>, vector<128x128xf32>
    %c0_14 = arith.constant 0 : index
    %c0_15 = arith.constant 0 : index
    %23 = vector.load %arg6[%c0_14, %c0_15] : memref<1x128xf32, #tpu.memory_space<vmem>>, vector<1x128xf32>
    %24 = vector.broadcast %23 : vector<1x128xf32> to vector<128x128xf32>
    %25 = arith.mulf %22, %24 : vector<128x128xf32>
    %cst_16 = arith.constant dense<0.000000e+00> : vector<128xf32>
    %26 = vector.multi_reduction <add>, %25, %cst_16 [1] : vector<128x128xf32> to vector<128xf32>
    %27 = vector.shape_cast %26 : vector<128xf32> to vector<128x1xf32>
    %c0_17 = arith.constant 0 : index
    %c0_18 = arith.constant 0 : index
    %28 = vector.load %arg7[%c0_17, %c0_18] : memref<1x1xf32, #tpu.memory_space<vmem>>, vector<1x1xf32>
    %29 = vector.broadcast %28 : vector<1x1xf32> to vector<128x1xf32>
    %30 = arith.addf %27, %29 : vector<128x1xf32>
    %31 = arith.negf %30 : vector<128x1xf32>
    %32 = math.exp %31 : vector<128x1xf32>
    %cst_19 = arith.constant 1.000000e+00 : f32
    %33 = vector.broadcast %cst_19 : f32 to vector<128x1xf32>
    %34 = arith.addf %33, %32 : vector<128x1xf32>
    %35 = arith.divf %33, %34 : vector<128x1xf32>
    %c0_20 = arith.constant 0 : index
    %c0_21 = arith.constant 0 : index
    %36 = vector.load %arg8[%c0_20, %c0_21] : memref<128x1xf32, #tpu.memory_space<vmem>>, vector<128x1xf32>
    tpu.vector_store %arg8[%c0_20, %c0_21], %35 {strides = array<i32>} : memref<128x1xf32, #tpu.memory_space<vmem>>, vector<128x1xf32>,
    return
  }
  func.func @transform_0(%arg0: i32) -> (i32, i32) {
    %c0_i32 = arith.constant 0 : i32
    %c0_i32_0 = arith.constant 0 : i32
    return %arg0, %c0_i32 : i32, i32
  }
  func.func @transform_1(%arg0: i32) -> (i32, i32) {
    %c0_i32 = arith.constant 0 : i32
    %c0_i32_0 = arith.constant 0 : i32
    %c0_i32_1 = arith.constant 0 : i32
    return %c0_i32, %c0_i32_0 : i32, i32
  }
  func.func @transform_2(%arg0: i32) -> (i32, i32) {
    %c0_i32 = arith.constant 0 : i32
    %c0_i32_0 = arith.constant 0 : i32
    %c0_i32_1 = arith.constant 0 : i32
    return %c0_i32, %c0_i32_0 : i32, i32
  }
  func.func @transform_3(%arg0: i32) -> (i32, i32) {
    %c0_i32 = arith.constant 0 : i32
    %c0_i32_0 = arith.constant 0 : i32
    %c0_i32_1 = arith.constant 0 : i32
    return %c0_i32, %c0_i32_0 : i32, i32
  }
  func.func @transform_4(%arg0: i32) -> (i32, i32) {
    %c0_i32 = arith.constant 0 : i32
    %c0_i32_0 = arith.constant 0 : i32
    %c0_i32_1 = arith.constant 0 : i32
    return %c0_i32, %c0_i32_0 : i32, i32
  }
  func.func @transform_5(%arg0: i32) -> (i32, i32) {
    %c0_i32 = arith.constant 0 : i32
    %c0_i32_0 = arith.constant 0 : i32
    %c0_i32_1 = arith.constant 0 : i32
    return %c0_i32, %c0_i32_0 : i32, i32
  }
  func.func @transform_6(%arg0: i32) -> (i32, i32) {
    %c0_i32 = arith.constant 0 : i32
    %c0_i32_0 = arith.constant 0 : i32
    %c0_i32_1 = arith.constant 0 : i32
    return %c0_i32, %c0_i32_0 : i32, i32
  }
  func.func @transform_7(%arg0: i32) -> (i32, i32) {
    %c0_i32 = arith.constant 0 : i32
    %c0_i32_0 = arith.constant 0 : i32
    return %arg0, %c0_i32 : i32, i32
  }
}

</mosaic_0001>

<bundles_post_ra>
// kernel: discriminator_forward.1
= control target key start
LH: loop header
LB: loop body
LE: loop exit
PB: predicated region body
PF: predicated region fallthrough
CT: control target
= control target key end

     0   :  { %s3341_s26 = smov 0   ;;  %s4682_s0 = inlined_call_operand.vmem [shape: f32[256,784], index: 0, kind: input, shape index: {}]   ;;  %s4683_s1 = inlined_call_operand.vmem [shape: bf16[784,256], index: 1, kind: input, shape index: {}]   ;;  %s4684_s2 = inlined_call_operand.vmem [shape: f32[1,256], index: 2, kind: input, shape index: {}]   ;;  %s4685_s3 = inlined_call_operand.vmem [shape: bf16[256,128], index: 3, kind: input, shape index: {}]   ;;  %s4686_s4 = inlined_call_operand.vmem [shape: f32[1,128], index: 4, kind: input, shape index: {}]   ;;  %s4687_s5 = inlined_call_operand.vmem [shape: f32[1,128], index: 5, kind: input, shape index: {}]   ;;  %s4688_s6 = inlined_call_operand.<no memory space> [shape: f32[1,1], index: 6, kind: input, shape index: {}]   ;;  %s4689_s7 = inlined_call_operand.vmem [shape: f32[256,1], index: 7, kind: output, shape index: {}]  }
   0x1   :  { %v12_v0 = vstv %s4688_s6 }
   0x2   :  { %13 = vst [vmem:[#allocation2] sm:$0x1] %v12_v0 }
   0x3 LB: > { %s2600_s27 = sadd.s32 4294967295, %s3296_s26   ;;  %p2604_p0 = scmp.ge.s32.totalorder %s3296_s26, 1  ;;  %s3296_s26 = sphi %s3341_s26, %s19_s26  }
   0x4   : > { %p241_p1 = scmp.lt.s32.totalorder %s3296_s26, 3 }
   0x6   : > { %p242_p2 = pnand %p2604_p0, %p241_p1 }
   0x8   : > { %245 = sbr.rel (%p242_p2) target bundleno = 980 (0x3d4), region = 48 }
   0xd   : > { %v2667_v1 = vld [vmem:[%s4683_s1 + $0x70] sm:$0xf]  ;;  %v3114_v2 = vld [vmem:[%s4683_s1 + $0x74] sm:$0xf0]  ;;  %v2659_v12 = vld [vmem:[%s4683_s1 + $0x60] sm:$0xf] }
   0xe   : > { %v2731_v3 = vld [vmem:[%s4683_s1 + $0xf0] sm:$0xf]  ;;  %v2668_v4 = vor.u32 %v3114_v2, %v2667_v1  ;;  %v3130_v5 = vld [vmem:[%s4683_s1 + $0xf4] sm:$0xf0]  ;;  %v3112_v14 = vld [vmem:[%s4683_s1 + $0x64] sm:$0xf0] }
   0xf   : > { %v2795_v6 = vld [vmem:[%s4683_s1 + $0x170] sm:$0xf]  ;;  %v3146_v7 = vld [vmem:[%s4683_s1 + $0x174] sm:$0xf0]  ;;  %v2732_v8 = vor.u32 %v3130_v5, %v2731_v3  ;;  %v2723_v15 = vld [vmem:[%s4683_s1 + $0xe0] sm:$0xf]  ;;  %v2660_v17 = vor.u32 %v3112_v14, %v2659_v12 }
  0x10   : > { %v2796_v9 = vor.u32 %v3146_v7, %v2795_v6  ;;  %v2859_v10 = vld [vmem:[%s4683_s1 + $0x1f0] sm:$0xf]  ;;  %v3162_v11 = vld [vmem:[%s4683_s1 + $0x1f4] sm:$0xf0]  ;;  %1075 = vmatpush.bf16.msra.mxu0 %v2668_v4  ;;  %v3128_v16 = vld [vmem:[%s4683_s1 + $0xe4] sm:$0xf0] }
  0x11   : > { %v2860_v13 = vor.u32 %v3162_v11, %v2859_v10  ;;  %1124 = vmatpush.bf16.msra.mxu1 %v2732_v8  ;;  %v2724_v18 = vor.u32 %v3128_v16, %v2723_v15  ;;  %v2787_v19 = vld [vmem:[%s4683_s1 + $0x160] sm:$0xf]  ;;  %v3144_v20 = vld [vmem:[%s4683_s1 + $0x164] sm:$0xf0]  ;;  %v2651_v24 = vld [vmem:[%s4683_s1 + $0x50] sm:$0xf] }
  0x12   : > { %1173 = vmatpush.bf16.msra.mxu2 %v2796_v9  ;;  %v2851_v21 = vld [vmem:[%s4683_s1 + $0x1e0] sm:$0xf]  ;;  %v2788_v22 = vor.u32 %v3144_v20, %v2787_v19  ;;  %v3160_v23 = vld [vmem:[%s4683_s1 + $0x1e4] sm:$0xf0]  ;;  %v3110_v25 = vld [vmem:[%s4683_s1 + $0x54] sm:$0xf0] }
  0x13   : > { %1222 = vmatpush.bf16.msra.mxu3 %v2860_v13  ;;  %v2852_v26 = vor.u32 %v3160_v23, %v2851_v21  ;;  %v2715_v27 = vld [vmem:[%s4683_s1 + $0xd0] sm:$0xf]  ;;  %v3126_v28 = vld [vmem:[%s4683_s1 + $0xd4] sm:$0xf0]  ;;  %v2652_v30 = vor.u32 %v3110_v25, %v2651_v24  ;;  %v2643_v36 = vld [vmem:[%s4683_s1 + $0x40] sm:$0xf] }
  0x14   : > { %v2779_v29 = vld [vmem:[%s4683_s1 + $0x150] sm:$0xf]  ;;  %1076 = vmatpush.bf16.msra.mxu0 %v2660_v17  ;;  %v3142_v31 = vld [vmem:[%s4683_s1 + $0x154] sm:$0xf0]  ;;  %v2716_v34 = vor.u32 %v3126_v28, %v2715_v27  ;;  %v3108_v37 = vld [vmem:[%s4683_s1 + $0x44] sm:$0xf0] }
  0x15   : > { %v2843_v32 = vld [vmem:[%s4683_s1 + $0x1d0] sm:$0xf]  ;;  %v3158_v33 = vld [vmem:[%s4683_s1 + $0x1d4] sm:$0xf0]  ;;  %1125 = vmatpush.bf16.msra.mxu1 %v2724_v18  ;;  %v2780_v35 = vor.u32 %v3142_v31, %v2779_v29  ;;  %v2707_v38 = vld [vmem:[%s4683_s1 + $0xc0] sm:$0xf]  ;;  %v2644_v45 = vor.u32 %v3108_v37, %v2643_v36 }
  0x16   : > { %1174 = vmatpush.bf16.msra.mxu2 %v2788_v22  ;;  %v2844_v39 = vor.u32 %v3158_v33, %v2843_v32  ;;  %v3124_v40 = vld [vmem:[%s4683_s1 + $0xc4] sm:$0xf0]  ;;  %v2771_v41 = vld [vmem:[%s4683_s1 + $0x140] sm:$0xf]  ;;  %v2635_v48 = vld [vmem:[%s4683_s1 + $0x30] sm:$0xf] }
  0x17   : > { %1223 = vmatpush.bf16.msra.mxu3 %v2852_v26  ;;  %v3140_v42 = vld [vmem:[%s4683_s1 + $0x144] sm:$0xf0]  ;;  %v2835_v43 = vld [vmem:[%s4683_s1 + $0x1c0] sm:$0xf]  ;;  %v2708_v46 = vor.u32 %v3124_v40, %v2707_v38  ;;  %v3106_v49 = vld [vmem:[%s4683_s1 + $0x34] sm:$0xf0] }
  0x18   : > { %v3156_v44 = vld [vmem:[%s4683_s1 + $0x1c4] sm:$0xf0]  ;;  %1077 = vmatpush.bf16.msra.mxu0 %v2652_v30  ;;  %v2772_v47 = vor.u32 %v3140_v42, %v2771_v41  ;;  %v2699_v50 = vld [vmem:[%s4683_s1 + $0xb0] sm:$0xf]  ;;  %v3122_v52 = vld [vmem:[%s4683_s1 + $0xb4] sm:$0xf0]  ;;  %v2636_v57 = vor.u32 %v3106_v49, %v2635_v48 }
  0x19   : > { %1126 = vmatpush.bf16.msra.mxu1 %v2716_v34  ;;  %v2836_v51 = vor.u32 %v3156_v44, %v2835_v43  ;;  %v2763_v53 = vld [vmem:[%s4683_s1 + $0x130] sm:$0xf]  ;;  %v3138_v54 = vld [vmem:[%s4683_s1 + $0x134] sm:$0xf0]  ;;  %v2700_v58 = vor.u32 %v3122_v52, %v2699_v50  ;;  %v2627_v60 = vld [vmem:[%s4683_s1 + $0x20] sm:$0xf] }
  0x1a   : > { %1175 = vmatpush.bf16.msra.mxu2 %v2780_v35  ;;  %v2827_v55 = vld [vmem:[%s4683_s1 + $0x1b0] sm:$0xf]  ;;  %v3154_v56 = vld [vmem:[%s4683_s1 + $0x1b4] sm:$0xf0]  ;;  %v2764_v59 = vor.u32 %v3138_v54, %v2763_v53  ;;  %v3104_v61 = vld [vmem:[%s4683_s1 + $0x24] sm:$0xf0] }
  0x1b   : > { %1224 = vmatpush.bf16.msra.mxu3 %v2844_v39  ;;  %v2691_v62 = vld [vmem:[%s4683_s1 + $0xa0] sm:$0xf]  ;;  %v2828_v63 = vor.u32 %v3154_v56, %v2827_v55  ;;  %v3120_v0 = vld [vmem:[%s4683_s1 + $0xa4] sm:$0xf0]  ;;  %v2628_v5 = vor.u32 %v3104_v61, %v2627_v60  ;;  %v2619_v6 = vld [vmem:[%s4683_s1 + $0x10] sm:$0xf] }
  0x1c   : > { %1078 = vmatpush.bf16.msra.mxu0 %v2644_v45  ;;  %v2755_v1 = vld [vmem:[%s4683_s1 + $0x120] sm:$0xf]  ;;  %v3136_v2 = vld [vmem:[%s4683_s1 + $0x124] sm:$0xf0]  ;;  %v3102_v7 = vld [vmem:[%s4683_s1 + $0x14] sm:$0xf0]  ;;  %v2692_v9 = vor.u32 %v3120_v0, %v2691_v62 }
  0x1d   : > { %1127 = vmatpush.bf16.msra.mxu1 %v2708_v46  ;;  %v2819_v3 = vld [vmem:[%s4683_s1 + $0x1a0] sm:$0xf]  ;;  %v3152_v4 = vld [vmem:[%s4683_s1 + $0x1a4] sm:$0xf0]  ;;  %v2683_v8 = vld [vmem:[%s4683_s1 + $0x90] sm:$0xf]  ;;  %v2756_v10 = vor.u32 %v3136_v2, %v2755_v1  ;;  %v2620_v19 = vor.u32 %v3102_v7, %v2619_v6 }
  0x1e   : > { %1176 = vmatpush.bf16.msra.mxu2 %v2772_v47  ;;  %v3118_v11 = vld [vmem:[%s4683_s1 + $0x94] sm:$0xf0]  ;;  %v2747_v12 = vld [vmem:[%s4683_s1 + $0x110] sm:$0xf]  ;;  %v2820_v14 = vor.u32 %v3152_v4, %v2819_v3  ;;  %s2605_s6 = sshll.u32 %s2600_s27, 4  ;;  %vm1050_vm0 = vcmask 130048  }
  0x1f   : > { %1225 = vmatpush.bf16.msra.mxu3 %v2836_v51  ;;  %v3134_v13 = vld [vmem:[%s4683_s1 + $0x114] sm:$0xf0]  ;;  %v2811_v15 = vld [vmem:[%s4683_s1 + $0x190] sm:$0xf]  ;;  %v2611_v17 = vld [vmem:[%s4683_s1] sm:$0xf]  ;;  %v2684_v24 = vor.u32 %v3118_v11, %v2683_v8 }
  0x20   : > { %1079 = vmatpush.bf16.msra.mxu0 %v2636_v57  ;;  %v3150_v16 = vld [vmem:[%s4683_s1 + $0x194] sm:$0xf0]  ;;  %v3100_v18 = vld [vmem:[%s4683_s1 + $0x4] sm:$0xf0]  ;;  %p275_p3 = scmp.lt.s32.totalorder %s2605_s6, 31  ;;  %v2748_v25 = vor.u32 %v3134_v13, %v2747_v12 }
  0x21   : > { %1128 = vmatpush.bf16.msra.mxu1 %v2700_v58  ;;  %v2675_v20 = vld [vmem:[%s4683_s1 + $0x80] sm:$0xf]  ;;  %v3116_v21 = vld [vmem:[%s4683_s1 + $0x84] sm:$0xf0]  ;;  %v2812_v28 = vor.u32 %v3150_v16, %v2811_v15  ;;  %v2923_v29 = vld [vmem:[%s4683_s1 + $0x270] sm:$0xf]  ;;  %v2612_v31 = vor.u32 %v3100_v18, %v2611_v17 }
  0x22   : > { %1177 = vmatpush.bf16.msra.mxu2 %v2764_v59  ;;  %v2739_v22 = vld [vmem:[%s4683_s1 + $0x100] sm:$0xf]  ;;  %v3132_v23 = vld [vmem:[%s4683_s1 + $0x104] sm:$0xf0]  ;;  %s4745_s6 = smov (!%p275_p3, %s2605_s6), 31  ;;  %v2676_v34 = vor.u32 %v3116_v21, %v2675_v20 }
  0x23   : > { %1226 = vmatpush.bf16.msra.mxu3 %v2828_v63  ;;  %v2803_v26 = vld [vmem:[%s4683_s1 + $0x180] sm:$0xf]  ;;  %v3148_v27 = vld [vmem:[%s4683_s1 + $0x184] sm:$0xf0]  ;;  %s3213_s22 = smul.u32 56, %s4745_s6  ;;  %v2740_v35 = vor.u32 %v3132_v23, %v2739_v22 }
  0x24   : > { %1080 = vmatpush.bf16.msra.mxu0 %v2628_v5  ;;  %v3178_v30 = vld [vmem:[%s4683_s1 + $0x274] sm:$0xf0]  ;;  %v2987_v32 = vld [vmem:[%s4683_s1 + $0x2f0] sm:$0xf]  ;;  %v2915_v36 = vld [vmem:[%s4683_s1 + $0x260] sm:$0xf]  ;;  %v2804_v38 = vor.u32 %v3148_v27, %v2803_v26 }
  0x25   : > { %1129 = vmatpush.bf16.msra.mxu1 %v2692_v9  ;;  %v3194_v33 = vld [vmem:[%s4683_s1 + $0x2f4] sm:$0xf0]  ;;  %s3561_s12 = scalar_lea.vmem %s4682_s0, %s3213_s22  ;;  %v3176_v37 = vld [vmem:[%s4683_s1 + $0x264] sm:$0xf0]  ;;  %v2924_v42 = vor.u32 %v3178_v30, %v2923_v29  ;;  %v2979_v43 = vld [vmem:[%s4683_s1 + $0x2e0] sm:$0xf] }
  0x26   : > { %1178 = vmatpush.bf16.msra.mxu2 %v2756_v10  ;;  %v288_v39 = vld [vmem:[%s3561_s12] sm:$0xff]  ;;  %v295_v40 = vld [vmem:[%s3561_s12 + $0x38] sm:$0xff]  ;;  %v289_v41 = vld [vmem:[%s3561_s12 + $0x8] sm:$0xff]  ;;  %v2988_v48 = vor.u32 %v3194_v33, %v2987_v32  ;;  %v2916_v55 = vor.u32 %v3176_v37, %v2915_v36 }
  0x27   : > { %1227 = vmatpush.bf16.msra.mxu3 %v2820_v14  ;;  %v3575_v44 = vpack.c.bf16 %v295_v40, %v288_v39  ;;  %v296_v45 = vld [vmem:[%s3561_s12 + $0x40] sm:$0xff]  ;;  %v290_v46 = vld [vmem:[%s3561_s12 + $0x10] sm:$0xff]  ;;  %v297_v47 = vld [vmem:[%s3561_s12 + $0x48] sm:$0xff] }
  0x28   : > { %1081 = vmatpush.bf16.msra.mxu0 %v2620_v19  ;;  %v3580_v49 = vpack.c.bf16 %v296_v45, %v289_v41  ;;  %v3582_v50 = vpack.c.bf16 %v297_v47, %v290_v46  ;;  %v291_v51 = vld [vmem:[%s3561_s12 + $0x18] sm:$0xff]  ;;  %v298_v52 = vld [vmem:[%s3561_s12 + $0x50] sm:$0xff]  ;;  %v3192_v53 = vld [vmem:[%s4683_s1 + $0x2e4] sm:$0xf0] }
  0x29   : > { %1130 = vmatpush.bf16.msra.mxu1 %v2684_v24  ;;  %v3589_v54 = vpack.c.bf16 %v298_v52, %v291_v51  ;;  %v2980_v56 = vor.u32 %v3192_v53, %v2979_v43  ;;  %v2907_v57 = vld [vmem:[%s4683_s1 + $0x250] sm:$0xf]  ;;  %v3174_v58 = vld [vmem:[%s4683_s1 + $0x254] sm:$0xf0]  ;;  %v309_v0 = vld [vmem:[%s3561_s12 + $0xa8] sm:$0xff] }
  0x2a   : > { %1179 = vmatpush.bf16.msra.mxu2 %v2748_v25  ;;  %v2908_v59 = vor.u32 %v3174_v58, %v2907_v57  ;;  %v2971_v60 = vld [vmem:[%s4683_s1 + $0x2d0] sm:$0xf]  ;;  %v3190_v61 = vld [vmem:[%s4683_s1 + $0x2d4] sm:$0xf0]  ;;  %v304_v3 = vld [vmem:[%s3561_s12 + $0x80] sm:$0xff] }
  0x2b   : > { %1228 = vmatpush.bf16.msra.mxu3 %v2812_v28  ;;  %v2972_v62 = vor.u32 %v3190_v61, %v2971_v60  ;;  %v302_v63 = vld [vmem:[%s3561_s12 + $0x70] sm:$0xff]  ;;  %v303_v1 = vld [vmem:[%s3561_s12 + $0x78] sm:$0xff]  ;;  %v305_v5 = vld [vmem:[%s3561_s12 + $0x88] sm:$0xff] }
  0x2c   : > { %1082 = vmatpush.bf16.msra.mxu0 %v2612_v31  ;;  %v310_v2 = vld [vmem:[%s3561_s12 + $0xb0] sm:$0xff]  ;;  %v311_v4 = vld [vmem:[%s3561_s12 + $0xb8] sm:$0xff]  ;;  %v312_v6 = vld [vmem:[%s3561_s12 + $0xc0] sm:$0xff]  ;;  %v3615_v7 = vpack.c.bf16 %v309_v0, %v302_v63 }
  0x2d   : > { %1131 = vmatpush.bf16.msra.mxu1 %v2676_v34  ;;  %v3617_v8 = vpack.c.bf16 %v310_v2, %v303_v1  ;;  %v3619_v9 = vpack.c.bf16 %v311_v4, %v304_v3  ;;  %v3621_v10 = vpack.c.bf16 %v312_v6, %v305_v5  ;;  %v2899_v11 = vld [vmem:[%s4683_s1 + $0x240] sm:$0xf]  ;;  %v3172_v12 = vld [vmem:[%s4683_s1 + $0x244] sm:$0xf0]  ;;  %v323_v18 = vld [vmem:[%s3561_s12 + $0x118] sm:$0xff] }
  0x2e   : > { %1180 = vmatpush.bf16.msra.mxu2 %v2740_v35  ;;  %v2900_v13 = vor.u32 %v3172_v12, %v2899_v11  ;;  %v2963_v14 = vld [vmem:[%s4683_s1 + $0x2c0] sm:$0xf]  ;;  %v3188_v15 = vld [vmem:[%s4683_s1 + $0x2c4] sm:$0xf0]  ;;  %v318_v21 = vld [vmem:[%s3561_s12 + $0xf0] sm:$0xff] }
  0x2f   : > { %1229 = vmatpush.bf16.msra.mxu3 %v2804_v38  ;;  %1083 = vmatmul.bf16.vlgmr.msra.gmra.mxu0 %v3575_v44  ;;  %v2964_v16 = vor.u32 %v3188_v15, %v2963_v14  ;;  %v316_v17 = vld [vmem:[%s3561_s12 + $0xe0] sm:$0xff]  ;;  %v317_v19 = vld [vmem:[%s3561_s12 + $0xe8] sm:$0xff]  ;;  %v319_v23 = vld [vmem:[%s3561_s12 + $0xf8] sm:$0xff] }
  0x30   : > { %1271 = vmatpush.bf16.msrb.mxu0 %v2924_v42  ;;  %1132 = vmatmul.bf16.vlgmr.msra.gmra.mxu1 %v3580_v49  ;;  %v324_v20 = vld [vmem:[%s3561_s12 + $0x120] sm:$0xff]  ;;  %v325_v22 = vld [vmem:[%s3561_s12 + $0x128] sm:$0xff]  ;;  %v326_v24 = vld [vmem:[%s3561_s12 + $0x130] sm:$0xff]  ;;  %v3647_v25 = vpack.c.bf16 %v323_v18, %v316_v17 }
  0x31   : > { %1320 = vmatpush.bf16.msrb.mxu1 %v2988_v48  ;;  %1181 = vmatmul.bf16.vlgmr.msra.gmra.mxu2 %v3582_v50  ;;  %v3649_v26 = vpack.c.bf16 %v324_v20, %v317_v19  ;;  %v3651_v27 = vpack.c.bf16 %v325_v22, %v318_v21  ;;  %v3653_v28 = vpack.c.bf16 %v326_v24, %v319_v23  ;;  %v2891_v29 = vld [vmem:[%s4683_s1 + $0x230] sm:$0xf]  ;;  %v3170_v30 = vld [vmem:[%s4683_s1 + $0x234] sm:$0xf0]  ;;  %v337_v36 = vld [vmem:[%s3561_s12 + $0x188] sm:$0xff] }
  0x32   : > { %1230 = vmatmul.bf16.vlgmr.msra.gmra.mxu3 %v3589_v54  ;;  %v2892_v31 = vor.u32 %v3170_v30, %v2891_v29  ;;  %v2955_v32 = vld [vmem:[%s4683_s1 + $0x2b0] sm:$0xf]  ;;  %v3186_v33 = vld [vmem:[%s4683_s1 + $0x2b4] sm:$0xf0]  ;;  %v332_v39 = vld [vmem:[%s3561_s12 + $0x160] sm:$0xff] }
  0x33   : > { %v2956_v34 = vor.u32 %v3186_v33, %v2955_v32  ;;  %v330_v35 = vld [vmem:[%s3561_s12 + $0x150] sm:$0xff]  ;;  %v331_v37 = vld [vmem:[%s3561_s12 + $0x158] sm:$0xff]  ;;  %v333_v41 = vld [vmem:[%s3561_s12 + $0x168] sm:$0xff] }
  0x34   : > { %1272 = vmatpush.bf16.msrb.mxu0 %v2916_v55  ;;  %v338_v38 = vld [vmem:[%s3561_s12 + $0x190] sm:$0xff]  ;;  %v339_v40 = vld [vmem:[%s3561_s12 + $0x198] sm:$0xff]  ;;  %v340_v42 = vld [vmem:[%s3561_s12 + $0x1a0] sm:$0xff]  ;;  %v3679_v43 = vpack.c.bf16 %v337_v36, %v330_v35 }
  0x35   : > { %1321 = vmatpush.bf16.msrb.mxu1 %v2980_v56  ;;  %v3681_v45 = vpack.c.bf16 %v338_v38, %v331_v37  ;;  %v3683_v46 = vpack.c.bf16 %v339_v40, %v332_v39  ;;  %v3685_v47 = vpack.c.bf16 %v340_v42, %v333_v41  ;;  %v2883_v48 = vld [vmem:[%s4683_s1 + $0x220] sm:$0xf]  ;;  %v3168_v51 = vld [vmem:[%s4683_s1 + $0x224] sm:$0xf0]  ;;  %v351_v58 = vld [vmem:[%s3561_s12 + $0x1f8] sm:$0xff] }
  0x36   : > { %v2884_v52 = vor.u32 %v3168_v51, %v2883_v48  ;;  %v2947_v53 = vld [vmem:[%s4683_s1 + $0x2a0] sm:$0xf]  ;;  %v3184_v55 = vld [vmem:[%s4683_s1 + $0x2a4] sm:$0xf0]  ;;  %v346_v61 = vld [vmem:[%s3561_s12 + $0x1d0] sm:$0xff] }
  0x37   : > { %v2948_v56 = vor.u32 %v3184_v55, %v2947_v53  ;;  %v344_v57 = vld [vmem:[%s3561_s12 + $0x1c0] sm:$0xff]  ;;  %v347_v63 = vld [vmem:[%s3561_s12 + $0x1d8] sm:$0xff]  ;;  %v354_v0 = vld [vmem:[%s3561_s12 + $0x210] sm:$0xff] }
  0x38   : > { %1273 = vmatpush.bf16.msrb.mxu0 %v2908_v59  ;;  %v345_v59 = vld [vmem:[%s3561_s12 + $0x1c8] sm:$0xff]  ;;  %v352_v60 = vld [vmem:[%s3561_s12 + $0x200] sm:$0xff]  ;;  %v3711_v1 = vpack.c.bf16 %v351_v58, %v344_v57  ;;  %v3717_v4 = vpack.c.bf16 %v354_v0, %v347_v63  ;;  %v2875_v5 = vld [vmem:[%s4683_s1 + $0x210] sm:$0xf] }
  0x39   : > { %1322 = vmatpush.bf16.msrb.mxu1 %v2972_v62  ;;  %v353_v62 = vld [vmem:[%s3561_s12 + $0x208] sm:$0xff]  ;;  %v3713_v2 = vpack.c.bf16 %v352_v60, %v345_v59  ;;  %v3166_v6 = vld [vmem:[%s4683_s1 + $0x214] sm:$0xf0]  ;;  %v3113_v11 = vld [vmem:[%s4683_s1 + $0x74] sm:$0xf] }
  0x3a   : > { %v3715_v3 = vpack.c.bf16 %v353_v62, %v346_v61  ;;  %v2876_v12 = vor.u32 %v3166_v6, %v2875_v5  ;;  %v3182_v14 = vld [vmem:[%s4683_s1 + $0x294] sm:$0xf0]  ;;  %v2669_v15 = vld [vmem:[%s4683_s1 + $0x78] sm:$0xf0]  ;;  %v3111_v18 = vld [vmem:[%s4683_s1 + $0x64] sm:$0xf] }
  0x3b   : > { %v2672_v17 = vor.u32 %v3113_v11, %v2669_v15  ;;  %v2661_v19 = vld [vmem:[%s4683_s1 + $0x68] sm:$0xf0]  ;;  %v3109_v21 = vld [vmem:[%s4683_s1 + $0x54] sm:$0xf]  ;;  %v2653_v22 = vld [vmem:[%s4683_s1 + $0x58] sm:$0xf0] }
  0x3c   : > { %1274 = vmatpush.bf16.msrb.mxu0 %v2900_v13  ;;  %v2939_v13 = vld [vmem:[%s4683_s1 + $0x290] sm:$0xf]  ;;  %v2664_v20 = vor.u32 %v3111_v18, %v2661_v19  ;;  %v365_v24 = vld [vmem:[%s3561_s12 + $0x268] sm:$0xff]  ;;  %v359_v29 = vld [vmem:[%s3561_s12 + $0x238] sm:$0xff]  ;;  %v2656_v30 = vor.u32 %v3109_v21, %v2653_v22 }
  0x3d   : > { %1323 = vmatpush.bf16.msrb.mxu1 %v2964_v16  ;;  %v2940_v16 = vor.u32 %v3182_v14, %v2939_v13  ;;  %1418 = vmatpush.bf16.msrb.mxu3 %v2672_v17  ;;  %v358_v23 = vld [vmem:[%s3561_s12 + $0x230] sm:$0xff]  ;;  %v360_v32 = vld [vmem:[%s3561_s12 + $0x240] sm:$0xff]  ;;  %v367_v33 = vld [vmem:[%s3561_s12 + $0x278] sm:$0xff] }
  0x3e   : > { %v368_v35 = vld [vmem:[%s3561_s12 + $0x280] sm:$0xff]  ;;  %v3761_v36 = vpack.c.bf16 %v365_v24, %v358_v23  ;;  %v2645_v38 = vld [vmem:[%s4683_s1 + $0x48] sm:$0xf0]  ;;  %v3771_v40 = vpack.c.bf16 %v367_v33, %v360_v32  ;;  %v3164_v51 = vld [vmem:[%s4683_s1 + $0x204] sm:$0xf0] }
  0x3f   : > { %1088 = vmatmul.bf16.gmra.mxu0 %v3615_v7  ;;  %v3107_v37 = vld [vmem:[%s4683_s1 + $0x44] sm:$0xf]  ;;  %v2867_v48 = vld [vmem:[%s4683_s1 + $0x200] sm:$0xf]  ;;  %v2637_v57 = vld [vmem:[%s4683_s1 + $0x38] sm:$0xf0] }
  0x40   : > { %1137 = vmatmul.bf16.gmra.mxu1 %v3617_v8  ;;  %1275 = vmatpush.bf16.msrb.mxu0 %v2892_v31  ;;  %v366_v31 = vld [vmem:[%s3561_s12 + $0x270] sm:$0xff]  ;;  %v2648_v42 = vor.u32 %v3107_v37, %v2645_v38  ;;  %v2868_v53 = vor.u32 %v3164_v51, %v2867_v48  ;;  %v2931_v55 = vld [vmem:[%s4683_s1 + $0x280] sm:$0xf]  ;;  %v3196_v61 = vld [vmem:[%s4683_s1 + $0x304] sm:$0xf0] }
  0x41   : > { %1186 = vmatmul.bf16.gmra.mxu2 %v3619_v9  ;;  %1324 = vmatpush.bf16.msrb.mxu1 %v2956_v34  ;;  %v361_v34 = vld [vmem:[%s3561_s12 + $0x248] sm:$0xff]  ;;  %v3769_v39 = vpack.c.bf16 %v366_v31, %v359_v29  ;;  %v2995_v60 = vld [vmem:[%s4683_s1 + $0x300] sm:$0xf]  ;;  %v3103_v63 = vld [vmem:[%s4683_s1 + $0x24] sm:$0xf] }
  0x42   : > { %1235 = vmatmul.bf16.gmra.mxu3 %v3621_v10  ;;  %v3773_v41 = vpack.c.bf16 %v368_v35, %v361_v34  ;;  %v2996_v62 = vor.u32 %v3196_v61, %v2995_v60  ;;  %v2629_v0 = vld [vmem:[%s4683_s1 + $0x28] sm:$0xf0]  ;;  %v3101_v6 = vld [vmem:[%s4683_s1 + $0x14] sm:$0xf]  ;;  %v2621_v11 = vld [vmem:[%s4683_s1 + $0x18] sm:$0xf0] }
  0x43   : > { %1419 = vmatpush.bf16.msrb.mxu3 %v2664_v20  ;;  %v2632_v5 = vor.u32 %v3103_v63, %v2629_v0  ;;  %v379_v13 = vld [vmem:[%s3561_s12 + $0x2d8] sm:$0xff]  ;;  %v373_v14 = vld [vmem:[%s3561_s12 + $0x2a8] sm:$0xff]  ;;  %v380_v15 = vld [vmem:[%s3561_s12 + $0x2e0] sm:$0xff]  ;;  %v2624_v20 = vor.u32 %v3101_v6, %v2621_v11 }
  0x44   : > { %1276 = vmatpush.bf16.msrb.mxu0 %v2884_v52  ;;  %v3105_v52 = vld [vmem:[%s4683_s1 + $0x34] sm:$0xf]  ;;  %1376 = vmatpush.bf16.msrb.mxu2 %v2996_v62  ;;  %v381_v17 = vld [vmem:[%s3561_s12 + $0x2e8] sm:$0xff]  ;;  %v375_v18 = vld [vmem:[%s3561_s12 + $0x2b8] sm:$0xff]  ;;  %v3825_v22 = vpack.c.bf16 %v380_v15, %v373_v14 }
  0x45   : > { %1325 = vmatpush.bf16.msrb.mxu1 %v2948_v56  ;;  %v3180_v56 = vld [vmem:[%s4683_s1 + $0x284] sm:$0xf0]  ;;  %v2640_v59 = vor.u32 %v3105_v52, %v2637_v57  ;;  %v382_v19 = vld [vmem:[%s3561_s12 + $0x2f0] sm:$0xff]  ;;  %v3099_v24 = vld [vmem:[%s4683_s1 + $0x4] sm:$0xf] }
  0x46   : > { %v2932_v58 = vor.u32 %v3180_v56, %v2931_v55  ;;  %v2613_v29 = vld [vmem:[%s4683_s1 + $0x8] sm:$0xf0]  ;;  %v3129_v32 = vld [vmem:[%s4683_s1 + $0xf4] sm:$0xf]  ;;  %v2733_v33 = vld [vmem:[%s4683_s1 + $0xf8] sm:$0xf0] }
  0x47   : > { %1420 = vmatpush.bf16.msrb.mxu3 %v2656_v30  ;;  %v3835_v30 = vpack.c.bf16 %v382_v19, %v375_v18  ;;  %v2616_v31 = vor.u32 %v3099_v24, %v2613_v29  ;;  %v2736_v34 = vor.u32 %v3129_v32, %v2733_v33  ;;  %v3145_v35 = vld [vmem:[%s4683_s1 + $0x174] sm:$0xf]  ;;  %v2797_v37 = vld [vmem:[%s4683_s1 + $0x178] sm:$0xf0]  ;;  %v393_v48 = vld [vmem:[%s3561_s12 + $0x348] sm:$0xff] }
  0x48   : > { %1277 = vmatpush.bf16.msrb.mxu0 %v2876_v12  ;;  %v372_v12 = vld [vmem:[%s3561_s12 + $0x2a0] sm:$0xff]  ;;  %v2800_v38 = vor.u32 %v3145_v35, %v2797_v37  ;;  %v387_v51 = vld [vmem:[%s3561_s12 + $0x318] sm:$0xff]  ;;  %v394_v52 = vld [vmem:[%s3561_s12 + $0x350] sm:$0xff] }
  0x49   : > { %1326 = vmatpush.bf16.msrb.mxu1 %v2940_v16  ;;  %v374_v16 = vld [vmem:[%s3561_s12 + $0x2b0] sm:$0xff]  ;;  %v3823_v21 = vpack.c.bf16 %v379_v13, %v372_v12  ;;  %v395_v55 = vld [vmem:[%s3561_s12 + $0x358] sm:$0xff]  ;;  %v389_v56 = vld [vmem:[%s3561_s12 + $0x328] sm:$0xff] }
  0x4a   : > { %v3827_v23 = vpack.c.bf16 %v381_v17, %v374_v16  ;;  %v396_v57 = vld [vmem:[%s3561_s12 + $0x360] sm:$0xff]  ;;  %v2725_v63 = vld [vmem:[%s4683_s1 + $0xe8] sm:$0xf0]  ;;  %v299_v14 = vld [vmem:[%s3561_s12 + $0x58] sm:$0xff] }
  0x4b   : > { %1421 = vmatpush.bf16.msrb.mxu3 %v2648_v42  ;;  %v386_v42 = vld [vmem:[%s3561_s12 + $0x310] sm:$0xff]  ;;  %v3867_v61 = vpack.c.bf16 %v396_v57, %v389_v56  ;;  %v3127_v62 = vld [vmem:[%s4683_s1 + $0xe4] sm:$0xf]  ;;  %v2789_v6 = vld [vmem:[%s4683_s1 + $0x168] sm:$0xf0] }
  0x4c   : > { %1278 = vmatpush.bf16.msrb.mxu0 %v2868_v53  ;;  %v388_v53 = vld [vmem:[%s3561_s12 + $0x320] sm:$0xff]  ;;  %v2728_v0 = vor.u32 %v3127_v62, %v2725_v63  ;;  %v293_v15 = vld [vmem:[%s3561_s12 + $0x28] sm:$0xff]  ;;  %v294_v18 = vld [vmem:[%s3561_s12 + $0x30] sm:$0xff] }
  0x4d   : > { %1327 = vmatpush.bf16.msrb.mxu1 %v2932_v58  ;;  %v3861_v58 = vpack.c.bf16 %v393_v48, %v386_v42  ;;  %v3865_v60 = vpack.c.bf16 %v395_v55, %v388_v53  ;;  %4708 = vst [vmem:[#allocation3_spill] sm:$0xff] %v3867_v61  ;;  %v554_v12 = vld [vmem:[%s4684_s2] sm:$0x3]  ;;  %v301_v19 = vld [vmem:[%s3561_s12 + $0x68] sm:$0xff]  ;;  %v3125_v35 = vld [vmem:[%s4683_s1 + $0xd4] sm:$0xf] }
  0x4e   : > { %v292_v13 = vld [vmem:[%s3561_s12 + $0x20] sm:$0xff]  ;;  %v3891_v16 = vperm.slane %v554_v12, 0  ;;  %v2717_v37 = vld [vmem:[%s4683_s1 + $0xd8] sm:$0xf0]  ;;  %v3141_v42 = vld [vmem:[%s4683_s1 + $0x154] sm:$0xf] }
  0x4f   : > { %1093 = vmatmul.bf16.gmra.mxu0 %v3647_v25  ;;  %1422 = vmatpush.bf16.msrb.mxu3 %v2640_v59  ;;  %v3863_v59 = vpack.c.bf16 %v394_v52, %v387_v51  ;;  %v300_v17 = vld [vmem:[%s3561_s12 + $0x60] sm:$0xff]  ;;  %v2781_v48 = vld [vmem:[%s4683_s1 + $0x158] sm:$0xf0] }
  0x50   : > { %1142 = vmatmul.bf16.gmra.mxu1 %v3649_v26  ;;  %1467 = vmatpush.bf16.msra.mxu0 %v2736_v34  ;;  %v3898_v29 = vpack.c.bf16 %v300_v17, %v293_v15  ;;  %v2784_v51 = vor.u32 %v3141_v42, %v2781_v48  ;;  %v308_v12 = vld [vmem:[%s3561_s12 + $0xa0] sm:$0xff]  ;;  %v2709_v42 = vld [vmem:[%s4683_s1 + $0xc8] sm:$0xf0] }
  0x51   : > { %1191 = vmatmul.bf16.gmra.mxu2 %v3651_v27  ;;  %1516 = vmatpush.bf16.msra.mxu1 %v2800_v38  ;;  %v2720_v38 = vor.u32 %v3125_v35, %v2717_v37 }
  0x52   : > { %1240 = vmatmul.bf16.gmra.mxu3 %v3653_v28  ;;  %4709 = vst [vmem:[#allocation4_spill] sm:$0xff] %v3898_v29 }
  0x53   : > { %1423 = vmatpush.bf16.msrb.mxu3 %v2632_v5  ;;  %v3143_v5 = vld [vmem:[%s4683_s1 + $0x164] sm:$0xf] }
  0x54   : > { %v2792_v11 = vor.u32 %v3143_v5, %v2789_v6  ;;  %1468 = vmatpush.bf16.msra.mxu0 %v2728_v0  ;;  %v306_v0 = vld [vmem:[%s3561_s12 + $0x90] sm:$0xff]  ;;  %v313_v5 = vld [vmem:[%s3561_s12 + $0xc8] sm:$0xff]  ;;  %v307_v6 = vld [vmem:[%s3561_s12 + $0x98] sm:$0xff] }
  0x55   : > { %v3929_v15 = vpack.c.bf16 %v313_v5, %v306_v0 }
  0x56   : > { %1517 = vmatpush.bf16.msra.mxu1 %v2792_v11  ;;  %v314_v11 = vld [vmem:[%s3561_s12 + $0xd0] sm:$0xff] }
  0x57   : > { %1424 = vmatpush.bf16.msrb.mxu3 %v2624_v20  ;;  %v3896_v20 = vpack.c.bf16 %v299_v14, %v292_v13  ;;  %v315_v13 = vld [vmem:[%s3561_s12 + $0xd8] sm:$0xff] }
  0x58   : > { %1469 = vmatpush.bf16.msra.mxu0 %v2720_v38  ;;  %v3123_v38 = vld [vmem:[%s4683_s1 + $0xc4] sm:$0xf] }
  0x59   : > { %v2712_v48 = vor.u32 %v3123_v38, %v2709_v42 }
  0x5a   : > { %1518 = vmatpush.bf16.msra.mxu1 %v2784_v51  ;;  %v3139_v51 = vld [vmem:[%s4683_s1 + $0x144] sm:$0xf] }
  0x5b   : > { %1425 = vmatpush.bf16.msrb.mxu3 %v2616_v31  ;;  %v3900_v31 = vpack.c.bf16 %v301_v19, %v294_v18 }
  0x5c   : > { %1470 = vmatpush.bf16.msra.mxu0 %v2712_v48 }
  0x5d   : > { %4710 = vst [vmem:[#allocation5_spill] sm:$0xff] %v3900_v31 }
  0x5f   : > { %1098 = vmatmul.bf16.gmra.mxu0 %v3679_v43 }
  0x60   : > { %1147 = vmatmul.bf16.gmra.mxu1 %v3681_v45 }
  0x61   : > { %1196 = vmatmul.bf16.gmra.mxu2 %v3683_v46 }
  0x62   : > { %1245 = vmatmul.bf16.gmra.mxu3 %v3685_v47 }
  0x6f   : > { %1103 = vmatmul.bf16.gmra.mxu0 %v3711_v1 }
  0x70   : > { %1152 = vmatmul.bf16.gmra.mxu1 %v3713_v2 }
  0x71   : > { %1201 = vmatmul.bf16.gmra.mxu2 %v3715_v3 }
  0x72   : > { %1250 = vmatmul.bf16.gmra.mxu3 %v3717_v4 }
  0x7f   : > { %1108 = vmatmul.bf16.gmra.mxu0 %v3761_v36 }
  0x80   : > { %1157 = vmatmul.bf16.gmra.mxu1 %v3769_v39 }
  0x81   : > { %1206 = vmatmul.bf16.gmra.mxu2 %v3771_v40 }
  0x82   : > { %1255 = vmatmul.bf16.gmra.mxu3 %v3773_v41 }
  0x8f   : > { %1113 = vmatmul.bf16.gmra.mxu0 %v3823_v21 }
  0x90   : > { %1162 = vmatmul.bf16.gmra.mxu1 %v3825_v22 }
  0x91   : > { %1211 = vmatmul.bf16.gmra.mxu2 %v3827_v23 }
  0x92   : > { %1260 = vmatmul.bf16.gmra.mxu3 %v3835_v30 }
  0x9f   : > { %1118 = vmatmul.bf16.gmra.mxu0 %v3861_v58 }
  0xa0   : > { %1167 = vmatmul.bf16.gmra.mxu1 %v3863_v59 }
  0xa1   : > { %1216 = vmatmul.bf16.gmra.mxu2 %v3865_v60 }
  0xa2   : > { %1265 = vmatmul.bf16.gmra.mxu3 %v3867_v61 }
  0xac   : > { %v1084_v24 = vpop.f32.mrf.mxu0 }
  0xad   : > { %v1085_v32 = vadd.f32 %v1084_v24, %v3891_v16  ;;  %v1133_v33 = vpop.f32.mrf.mxu1  ;;  %v3931_v24 = vpack.c.bf16 %v314_v11, %v307_v6  ;;  %v320_v6 = vld [vmem:[%s3561_s12 + $0x100] sm:$0xff]  ;;  %v327_v11 = vld [vmem:[%s3561_s12 + $0x138] sm:$0xff] }
  0xaf   : > { %v1134_v34 = vadd.f32 %v1133_v33, %v1085_v32  ;;  %1279 = vmatmul.bf16.vlgmr.msrb.gmra.mxu0 %v3896_v20  ;;  %4711 = vst [vmem:[#allocation6_spill] sm:$0xff] %v3931_v24  ;;  %v3933_v32 = vpack.c.bf16 %v315_v13, %v308_v12  ;;  %v321_v12 = vld [vmem:[%s3561_s12 + $0x108] sm:$0xff]  ;;  %v328_v13 = vld [vmem:[%s3561_s12 + $0x140] sm:$0xff] }
  0xb0   : > { %1328 = vmatmul.bf16.vlgmr.msrb.gmra.mxu1 %v3898_v29  ;;  %v3966_v38 = vpack.c.bf16 %v328_v13, %v321_v12 }
  0xb1   : > { %3001 = vmatmul.msk.bf16.vlgmr.msrb.gmra.mxu2 %vm1050_vm0, %v3900_v31  ;;  %4712 = vst [vmem:[#allocation7_spill] sm:$0xff] %v3933_v32 }
  0xb2   : > { %1426 = vmatmul.bf16.vlgmr.msrb.gmra.mxu3 %v3575_v44  ;;  %4713 = vst [vmem:[#allocation8_spill] sm:$0xff] %v3966_v38 }
  0xb4   : > { %v1182_v52 = vpop.f32.mrf.mxu2  ;;  %v1086_v55 = vpop.f32.mrf.mxu0 }
  0xb5   : > { %v1183_v53 = vadd.f32 %v1182_v52, %v1134_v34  ;;  %v1231_v44 = vpop.f32.mrf.mxu3  ;;  %v1087_v56 = vadd.f32 %v1086_v55, %v3891_v16  ;;  %v1135_v57 = vpop.f32.mrf.mxu1  ;;  %v2773_v52 = vld [vmem:[%s4683_s1 + $0x148] sm:$0xf0] }
  0xb7   : > { %v3921_v62 = vadd.f32 %v1231_v44, %v1183_v53  ;;  %v1136_v63 = vadd.f32 %v1135_v57, %v1087_v56  ;;  %v2776_v53 = vor.u32 %v3139_v51, %v2773_v52 }
  0xb9   : > { %1519 = vmatpush.bf16.msra.mxu1 %v2776_v53 }
  0xbc   : > { %v1184_v14 = vpop.f32.mrf.mxu2  ;;  %v1089_v18 = vpop.f32.mrf.mxu0 }
  0xbd   : > { %v1185_v17 = vadd.f32 %v1184_v14, %v1136_v63  ;;  %v1233_v19 = vpop.f32.mrf.mxu3  ;;  %v1090_v33 = vadd.f32 %v1089_v18, %v3891_v16  ;;  %v1138_v34 = vpop.f32.mrf.mxu1  ;;  %v322_v14 = vld [vmem:[%s3561_s12 + $0x110] sm:$0xff] }
  0xbf   : > { %v3936_v35 = vadd.f32 %v1233_v19, %v1185_v17  ;;  %v1139_v37 = vadd.f32 %v1138_v34, %v1090_v33  ;;  %1284 = vmatmul.bf16.gmra.mxu0 %v3929_v15  ;;  %v329_v17 = vld [vmem:[%s3561_s12 + $0x148] sm:$0xff]  ;;  %v3964_v19 = vpack.c.bf16 %v327_v11, %v320_v6 }
  0xc0   : > { %1333 = vmatmul.bf16.gmra.mxu1 %v3931_v24  ;;  %v3968_v42 = vpack.c.bf16 %v329_v17, %v322_v14 }
  0xc1   : > { %3002 = vmatmul.msk.bf16.gmra.mxu2 %vm1050_vm0, %v3933_v32 }
  0xc2   : > { %1431 = vmatmul.bf16.gmra.mxu3 %v3615_v7  ;;  %4714 = vst [vmem:[#allocation9_spill] sm:$0xff] %v3968_v42 }
  0xc4   : > { %v1187_v55 = vpop.f32.mrf.mxu2  ;;  %v1091_v56 = vpop.f32.mrf.mxu0 }
  0xc5   : > { %v1188_v44 = vadd.f32 %v1187_v55, %v1139_v37  ;;  %v1236_v7 = vpop.f32.mrf.mxu3  ;;  %v1092_v57 = vadd.f32 %v1091_v56, %v3891_v16  ;;  %v1140_v63 = vpop.f32.mrf.mxu1  ;;  %v3121_v55 = vld [vmem:[%s4683_s1 + $0xb4] sm:$0xf] }
  0xc7   : > { %v3956_v0 = vadd.f32 %v1236_v7, %v1188_v44  ;;  %v1141_v5 = vadd.f32 %v1140_v63, %v1092_v57  ;;  %v2701_v44 = vld [vmem:[%s4683_s1 + $0xb8] sm:$0xf0]  ;;  %v3137_v7 = vld [vmem:[%s4683_s1 + $0x134] sm:$0xf] }
  0xc8   : > { %v2704_v56 = vor.u32 %v3121_v55, %v2701_v44  ;;  %v2765_v57 = vld [vmem:[%s4683_s1 + $0x138] sm:$0xf0] }
  0xc9   : > { %v2768_v63 = vor.u32 %v3137_v7, %v2765_v57 }
  0xca   : > { %1471 = vmatpush.bf16.msra.mxu0 %v2704_v56 }
  0xcb   : > { %1520 = vmatpush.bf16.msra.mxu1 %v2768_v63 }
  0xcc   : > { %v1189_v18 = vpop.f32.mrf.mxu2  ;;  %v1094_v34 = vpop.f32.mrf.mxu0 }
  0xcd   : > { %v1190_v33 = vadd.f32 %v1189_v18, %v1141_v5  ;;  %v1238_v37 = vpop.f32.mrf.mxu3  ;;  %v1095_v48 = vadd.f32 %v1094_v34, %v3891_v16  ;;  %v1143_v51 = vpop.f32.mrf.mxu1  ;;  %v334_v18 = vld [vmem:[%s3561_s12 + $0x170] sm:$0xff]  ;;  %v335_v34 = vld [vmem:[%s3561_s12 + $0x178] sm:$0xff] }
  0xcf   : > { %v3971_v52 = vadd.f32 %v1238_v37, %v1190_v33  ;;  %v1144_v53 = vadd.f32 %v1143_v51, %v1095_v48  ;;  %1289 = vmatmul.bf16.gmra.mxu0 %v3964_v19  ;;  %v341_v33 = vld [vmem:[%s3561_s12 + $0x1a8] sm:$0xff]  ;;  %v342_v37 = vld [vmem:[%s3561_s12 + $0x1b0] sm:$0xff]  ;;  %v336_v48 = vld [vmem:[%s3561_s12 + $0x180] sm:$0xff] }
  0xd0   : > { %1338 = vmatmul.bf16.gmra.mxu1 %v3966_v38  ;;  %v343_v51 = vld [vmem:[%s3561_s12 + $0x1b8] sm:$0xff]  ;;  %v3999_v44 = vpack.c.bf16 %v341_v33, %v334_v18  ;;  %v4001_v57 = vpack.c.bf16 %v342_v37, %v335_v34  ;;  %v3135_v18 = vld [vmem:[%s4683_s1 + $0x124] sm:$0xf]  ;;  %v2757_v33 = vld [vmem:[%s4683_s1 + $0x128] sm:$0xf0] }
  0xd1   : > { %3003 = vmatmul.msk.bf16.gmra.mxu2 %vm1050_vm0, %v3968_v42  ;;  %v4003_v63 = vpack.c.bf16 %v343_v51, %v336_v48  ;;  %v2760_v34 = vor.u32 %v3135_v18, %v2757_v33 }
  0xd2   : > { %1436 = vmatmul.bf16.gmra.mxu3 %v3647_v25  ;;  %4715 = vst [vmem:[#allocation10_spill] sm:$0xff] %v4001_v57 }
  0xd3   : > { %4716 = vst [vmem:[#allocation11_spill] sm:$0xff] %v4003_v63  ;;  %1521 = vmatpush.bf16.msra.mxu1 %v2760_v34 }
  0xd4   : > { %v1192_v5 = vpop.f32.mrf.mxu2  ;;  %v1096_v11 = vpop.f32.mrf.mxu0 }
  0xd5   : > { %v1193_v6 = vadd.f32 %v1192_v5, %v1144_v53  ;;  %v1241_v25 = vpop.f32.mrf.mxu3  ;;  %v1097_v12 = vadd.f32 %v1096_v11, %v3891_v16  ;;  %v1145_v13 = vpop.f32.mrf.mxu1 }
  0xd7   : > { %v3991_v14 = vadd.f32 %v1241_v25, %v1193_v6  ;;  %v1146_v17 = vadd.f32 %v1145_v13, %v1097_v12  ;;  %v3119_v12 = vld [vmem:[%s4683_s1 + $0xa4] sm:$0xf]  ;;  %v2693_v13 = vld [vmem:[%s4683_s1 + $0xa8] sm:$0xf0] }
  0xdc   : > { %v1194_v55 = vpop.f32.mrf.mxu2  ;;  %v1099_v53 = vpop.f32.mrf.mxu0 }
  0xdd   : > { %v1195_v56 = vadd.f32 %v1194_v55, %v1146_v17  ;;  %v1243_v7 = vpop.f32.mrf.mxu3  ;;  %v1100_v5 = vadd.f32 %v1099_v53, %v3891_v16  ;;  %v1148_v6 = vpop.f32.mrf.mxu1  ;;  %v2696_v17 = vor.u32 %v3119_v12, %v2693_v13  ;;  %v349_v12 = vld [vmem:[%s3561_s12 + $0x1e8] sm:$0xff]  ;;  %v356_v13 = vld [vmem:[%s3561_s12 + $0x220] sm:$0xff] }
  0xde   : > { %v4036_v42 = vpack.c.bf16 %v356_v13, %v349_v12  ;;  %v3133_v13 = vld [vmem:[%s4683_s1 + $0x114] sm:$0xf] }
  0xdf   : > { %v4006_v11 = vadd.f32 %v1243_v7, %v1195_v56  ;;  %v1149_v25 = vadd.f32 %v1148_v6, %v1100_v5  ;;  %1294 = vmatmul.bf16.gmra.mxu0 %v3999_v44  ;;  %v348_v5 = vld [vmem:[%s3561_s12 + $0x1e0] sm:$0xff]  ;;  %v355_v6 = vld [vmem:[%s3561_s12 + $0x218] sm:$0xff] }
  0xe0   : > { %1343 = vmatmul.bf16.gmra.mxu1 %v4001_v57  ;;  %1472 = vmatpush.bf16.msra.mxu0 %v2696_v17  ;;  %v357_v57 = vld [vmem:[%s3561_s12 + $0x228] sm:$0xff]  ;;  %v4034_v33 = vpack.c.bf16 %v355_v6, %v348_v5  ;;  %4717 = vst [vmem:[#allocation12_spill] sm:$0xff] %v4036_v42  ;;  %v3177_v6 = vld [vmem:[%s4683_s1 + $0x274] sm:$0xf] }
  0xe1   : > { %3004 = vmatmul.msk.bf16.gmra.mxu2 %vm1050_vm0, %v4003_v63  ;;  %v350_v63 = vld [vmem:[%s3561_s12 + $0x1f0] sm:$0xff] }
  0xe2   : > { %1441 = vmatmul.bf16.gmra.mxu3 %v3679_v43  ;;  %v4038_v34 = vpack.c.bf16 %v357_v57, %v350_v63  ;;  %v3117_v57 = vld [vmem:[%s4683_s1 + $0x94] sm:$0xf]  ;;  %v2685_v63 = vld [vmem:[%s4683_s1 + $0x98] sm:$0xf0] }
  0xe3   : > { %v2688_v12 = vor.u32 %v3117_v57, %v2685_v63 }
  0xe4   : > { %v1197_v37 = vpop.f32.mrf.mxu2  ;;  %v1101_v51 = vpop.f32.mrf.mxu0  ;;  %4718 = vst [vmem:[#allocation13_spill] sm:$0xff] %v4038_v34 }
  0xe5   : > { %v1198_v48 = vadd.f32 %v1197_v37, %v1149_v25  ;;  %v1246_v43 = vpop.f32.mrf.mxu3  ;;  %v1102_v55 = vadd.f32 %v1101_v51, %v3891_v16  ;;  %v1150_v56 = vpop.f32.mrf.mxu1  ;;  %1473 = vmatpush.bf16.msra.mxu0 %v2688_v12 }
  0xe7   : > { %v4026_v53 = vadd.f32 %v1246_v43, %v1198_v48  ;;  %v1151_v7 = vadd.f32 %v1150_v56, %v1102_v55  ;;  %v3161_v56 = vld [vmem:[%s4683_s1 + $0x1f4] sm:$0xf] }
  0xec   : > { %v1199_v18 = vpop.f32.mrf.mxu2  ;;  %v1104_v25 = vpop.f32.mrf.mxu0 }
  0xed   : > { %v1200_v17 = vadd.f32 %v1199_v18, %v1151_v7  ;;  %v1248_v37 = vpop.f32.mrf.mxu3  ;;  %v1105_v48 = vadd.f32 %v1104_v25, %v3891_v16  ;;  %v1153_v51 = vpop.f32.mrf.mxu1  ;;  %v2861_v7 = vld [vmem:[%s4683_s1 + $0x1f8] sm:$0xf0] }
  0xee   : > { %v2864_v5 = vor.u32 %v3161_v56, %v2861_v7  ;;  %v2749_v18 = vld [vmem:[%s4683_s1 + $0x118] sm:$0xf0] }
  0xef   : > { %v4041_v43 = vadd.f32 %v1248_v37, %v1200_v17  ;;  %v1154_v55 = vadd.f32 %v1153_v51, %v1105_v48  ;;  %1299 = vmatmul.bf16.gmra.mxu0 %v4034_v33  ;;  %v2925_v17 = vld [vmem:[%s4683_s1 + $0x278] sm:$0xf0]  ;;  %v2752_v25 = vor.u32 %v3133_v13, %v2749_v18  ;;  %v2853_v48 = vld [vmem:[%s4683_s1 + $0x1e8] sm:$0xf0] }
  0xf0   : > { %1348 = vmatmul.bf16.gmra.mxu1 %v4036_v42  ;;  %1565 = vmatpush.bf16.msra.mxu2 %v2864_v5  ;;  %v2928_v37 = vor.u32 %v3177_v6, %v2925_v17  ;;  %v3175_v5 = vld [vmem:[%s4683_s1 + $0x264] sm:$0xf]  ;;  %v2917_v6 = vld [vmem:[%s4683_s1 + $0x268] sm:$0xf0]  ;;  %v3157_v17 = vld [vmem:[%s4683_s1 + $0x1d4] sm:$0xf] }
  0xf1   : > { %3005 = vmatmul.msk.bf16.gmra.mxu2 %vm1050_vm0, %v4038_v34  ;;  %1522 = vmatpush.bf16.msra.mxu1 %v2752_v25  ;;  %v2845_v25 = vld [vmem:[%s4683_s1 + $0x1d8] sm:$0xf0] }
  0xf2   : > { %1446 = vmatmul.bf16.gmra.mxu3 %v3711_v1  ;;  %v3159_v1 = vld [vmem:[%s4683_s1 + $0x1e4] sm:$0xf] }
  0xf3   : > { %v2856_v56 = vor.u32 %v3159_v1, %v2853_v48  ;;  %1614 = vmatpush.bf16.msra.mxu3 %v2928_v37  ;;  %v362_v1 = vld [vmem:[%s3561_s12 + $0x250] sm:$0xff]  ;;  %v369_v48 = vld [vmem:[%s3561_s12 + $0x288] sm:$0xff] }
  0xf4   : > { %v1202_v51 = vpop.f32.mrf.mxu2  ;;  %v1106_v57 = vpop.f32.mrf.mxu0 }
  0xf5   : > { %v1203_v7 = vadd.f32 %v1202_v51, %v1154_v55  ;;  %v1251_v63 = vpop.f32.mrf.mxu3  ;;  %v1107_v12 = vadd.f32 %v1106_v57, %v3891_v16  ;;  %v1155_v13 = vpop.f32.mrf.mxu1  ;;  %v2920_v55 = vor.u32 %v3175_v5, %v2917_v6  ;;  %1566 = vmatpush.bf16.msra.mxu2 %v2856_v56  ;;  %v2848_v51 = vor.u32 %v3157_v17, %v2845_v25  ;;  %v363_v57 = vld [vmem:[%s3561_s12 + $0x258] sm:$0xff]  ;;  %v364_v5 = vld [vmem:[%s3561_s12 + $0x260] sm:$0xff] }
  0xf6   : > { %v2909_v56 = vld [vmem:[%s4683_s1 + $0x258] sm:$0xf0]  ;;  %v4111_v17 = vpack.c.bf16 %v369_v48, %v362_v1 }
  0xf7   : > { %v4085_v18 = vadd.f32 %v1251_v63, %v1203_v7  ;;  %v1156_v37 = vadd.f32 %v1155_v13, %v1107_v12  ;;  %1615 = vmatpush.bf16.msra.mxu3 %v2920_v55  ;;  %v3173_v7 = vld [vmem:[%s4683_s1 + $0x254] sm:$0xf]  ;;  %v371_v6 = vld [vmem:[%s3561_s12 + $0x298] sm:$0xff]  ;;  %v3155_v12 = vld [vmem:[%s4683_s1 + $0x1c4] sm:$0xf] }
  0xf8   : > { %v370_v63 = vld [vmem:[%s3561_s12 + $0x290] sm:$0xff]  ;;  %v2912_v34 = vor.u32 %v3173_v7, %v2909_v56  ;;  %v2837_v13 = vld [vmem:[%s4683_s1 + $0x1c8] sm:$0xf0]  ;;  %v4115_v31 = vpack.c.bf16 %v371_v6, %v364_v5 }
  0xf9   : > { %1567 = vmatpush.bf16.msra.mxu2 %v2848_v51  ;;  %v2840_v25 = vor.u32 %v3155_v12, %v2837_v13  ;;  %v4113_v24 = vpack.c.bf16 %v370_v63, %v363_v57  ;;  %v3171_v51 = vld [vmem:[%s4683_s1 + $0x244] sm:$0xf]  ;;  %v2901_v7 = vld [vmem:[%s4683_s1 + $0x248] sm:$0xf0]  ;;  %v2829_v63 = vld [vmem:[%s4683_s1 + $0x1b8] sm:$0xf0] }
  0xfa   : > { %4720 = vst [vmem:[#allocation15_spill] sm:$0xff] %v4115_v31  ;;  %v3169_v5 = vld [vmem:[%s4683_s1 + $0x234] sm:$0xf]  ;;  %v3131_v12 = vld [vmem:[%s4683_s1 + $0x104] sm:$0xf] }
  0xfb   : > { %4719 = vst [vmem:[#allocation14_spill] sm:$0xff] %v4113_v24  ;;  %1616 = vmatpush.bf16.msra.mxu3 %v2912_v34  ;;  %v3153_v34 = vld [vmem:[%s4683_s1 + $0x1b4] sm:$0xf]  ;;  %v2741_v13 = vld [vmem:[%s4683_s1 + $0x108] sm:$0xf0] }
  0xfc   : > { %v1204_v55 = vpop.f32.mrf.mxu2  ;;  %v1109_v38 = vpop.f32.mrf.mxu0 }
  0xfd   : > { %v1205_v42 = vadd.f32 %v1204_v55, %v1156_v37  ;;  %v1253_v32 = vpop.f32.mrf.mxu3  ;;  %v1110_v1 = vadd.f32 %v1109_v38, %v3891_v16  ;;  %v1158_v48 = vpop.f32.mrf.mxu1  ;;  %1568 = vmatpush.bf16.msra.mxu2 %v2840_v25  ;;  %v2904_v37 = vor.u32 %v3171_v51, %v2901_v7  ;;  %v2677_v38 = vld [vmem:[%s4683_s1 + $0x88] sm:$0xf0]  ;;  %v2893_v55 = vld [vmem:[%s4683_s1 + $0x238] sm:$0xf0]  ;;  %v2744_v25 = vor.u32 %v3131_v12, %v2741_v13  ;;  %v3149_v12 = vld [vmem:[%s4683_s1 + $0x194] sm:$0xf] }
  0xfe   : > { %v2896_v51 = vor.u32 %v3169_v5, %v2893_v55  ;;  %v2821_v7 = vld [vmem:[%s4683_s1 + $0x1a8] sm:$0xf0]  ;;  %v2813_v13 = vld [vmem:[%s4683_s1 + $0x198] sm:$0xf0] }
  0xff   : > { %v4124_v56 = vadd.f32 %v1253_v32, %v1205_v42  ;;  %v1159_v57 = vadd.f32 %v1158_v48, %v1110_v1  ;;  %1304 = vmatmul.bf16.gmra.mxu0 %v4111_v17  ;;  %v3115_v32 = vld [vmem:[%s4683_s1 + $0x84] sm:$0xf]  ;;  %v2832_v42 = vor.u32 %v3153_v34, %v2829_v63  ;;  %1617 = vmatpush.bf16.msra.mxu3 %v2904_v37 }
 0x100   : > { %1353 = vmatmul.bf16.gmra.mxu1 %v4113_v24  ;;  %v2680_v6 = vor.u32 %v3115_v32, %v2677_v38  ;;  %v3167_v37 = vld [vmem:[%s4683_s1 + $0x224] sm:$0xf]  ;;  %v2885_v38 = vld [vmem:[%s4683_s1 + $0x228] sm:$0xf0] }
 0x101   : > { %3006 = vmatmul.msk.bf16.gmra.mxu2 %vm1050_vm0, %v4115_v31  ;;  %1523 = vmatpush.bf16.msra.mxu1 %v2744_v25  ;;  %v376_v25 = vld [vmem:[%s3561_s12 + $0x2c0] sm:$0xff] }
 0x102   : > { %1451 = vmatmul.bf16.gmra.mxu3 %v3761_v36  ;;  %1569 = vmatpush.bf16.msra.mxu2 %v2832_v42  ;;  %v3151_v36 = vld [vmem:[%s4683_s1 + $0x1a4] sm:$0xf] }
 0x103   : > { %1474 = vmatpush.bf16.msra.mxu0 %v2680_v6  ;;  %v2824_v48 = vor.u32 %v3151_v36, %v2821_v7  ;;  %1618 = vmatpush.bf16.msra.mxu3 %v2896_v51  ;;  %v2888_v6 = vor.u32 %v3167_v37, %v2885_v38  ;;  %v383_v36 = vld [vmem:[%s3561_s12 + $0x2f8] sm:$0xff]  ;;  %v2816_v7 = vor.u32 %v3149_v12, %v2813_v13  ;;  %v3147_v38 = vld [vmem:[%s4683_s1 + $0x184] sm:$0xf] }
 0x104   : > { %v1207_v1 = vpop.f32.mrf.mxu2  ;;  %v1111_v63 = vpop.f32.mrf.mxu0  ;;  %v2877_v51 = vld [vmem:[%s4683_s1 + $0x218] sm:$0xf0]  ;;  %v4194_v12 = vpack.c.bf16 %v383_v36, %v376_v25 }
 0x105   : > { %v1208_v34 = vadd.f32 %v1207_v1, %v1159_v57  ;;  %v1256_v32 = vpop.f32.mrf.mxu3  ;;  %v1112_v42 = vadd.f32 %v1111_v63, %v3891_v16  ;;  %v1160_v5 = vpop.f32.mrf.mxu1  ;;  %v377_v1 = vld [vmem:[%s3561_s12 + $0x2c8] sm:$0xff]  ;;  %v378_v63 = vld [vmem:[%s3561_s12 + $0x2d0] sm:$0xff] }
 0x106   : > { %1570 = vmatpush.bf16.msra.mxu2 %v2824_v48  ;;  %v384_v48 = vld [vmem:[%s3561_s12 + $0x300] sm:$0xff] }
 0x107   : > { %v4168_v57 = vadd.f32 %v1256_v32, %v1208_v34  ;;  %v1161_v55 = vadd.f32 %v1160_v5, %v1112_v42  ;;  %v3165_v34 = vld [vmem:[%s4683_s1 + $0x214] sm:$0xf]  ;;  %v385_v32 = vld [vmem:[%s3561_s12 + $0x308] sm:$0xff]  ;;  %1619 = vmatpush.bf16.msra.mxu3 %v2888_v6  ;;  %v4196_v61 = vpack.c.bf16 %v384_v48, %v377_v1 }
 0x108   : > { %v2880_v37 = vor.u32 %v3165_v34, %v2877_v51  ;;  %v2805_v42 = vld [vmem:[%s4683_s1 + $0x188] sm:$0xf0]  ;;  %v4198_v6 = vpack.c.bf16 %v385_v32, %v378_v63  ;;  %v3193_v48 = vld [vmem:[%s4683_s1 + $0x2f4] sm:$0xf] }
 0x109   : > { %v2808_v13 = vor.u32 %v3147_v38, %v2805_v42  ;;  %4721 = vst [vmem:[#allocation16_spill] sm:$0xff] %v4196_v61  ;;  %v2869_v34 = vld [vmem:[%s4683_s1 + $0x208] sm:$0xf0] }
 0x10a   : > { %1571 = vmatpush.bf16.msra.mxu2 %v2816_v7  ;;  %4722 = vst [vmem:[#allocation17_spill] sm:$0xff] %v4198_v6  ;;  %v3163_v7 = vld [vmem:[%s4683_s1 + $0x204] sm:$0xf]  ;;  %v2997_v63 = vld [vmem:[%s4683_s1 + $0x308] sm:$0xf0] }
 0x10b   : > { %1620 = vmatpush.bf16.msra.mxu3 %v2880_v37 }
 0x10c   : > { %v1209_v5 = vpop.f32.mrf.mxu2  ;;  %v1114_v24 = vpop.f32.mrf.mxu0 }
 0x10d   : > { %v1210_v31 = vadd.f32 %v1209_v5, %v1161_v55  ;;  %v1258_v29 = vpop.f32.mrf.mxu3  ;;  %v1115_v51 = vadd.f32 %v1114_v24, %v3891_v16  ;;  %v1163_v25 = vpop.f32.mrf.mxu1  ;;  %v2872_v55 = vor.u32 %v3163_v7, %v2869_v34  ;;  %v3195_v24 = vld [vmem:[%s4683_s1 + $0x304] sm:$0xf] }
 0x10e   : > { %1572 = vmatpush.bf16.msra.mxu2 %v2808_v13  ;;  %v3000_v32 = vor.u32 %v3195_v24, %v2997_v63 }
 0x10f   : > { %v4207_v36 = vadd.f32 %v1258_v29, %v1210_v31  ;;  %v1164_v1 = vadd.f32 %v1163_v25, %v1115_v51  ;;  %1309 = vmatmul.bf16.gmra.mxu0 %v4194_v12  ;;  %v2989_v29 = vld [vmem:[%s4683_s1 + $0x2f8] sm:$0xf0]  ;;  %1621 = vmatpush.bf16.msra.mxu3 %v2872_v55  ;;  %v390_v51 = vld [vmem:[%s3561_s12 + $0x330] sm:$0xff]  ;;  %v397_v25 = vld [vmem:[%s3561_s12 + $0x368] sm:$0xff] }
 0x110   : > { %1358 = vmatmul.bf16.gmra.mxu1 %v4196_v61  ;;  %v2992_v31 = vor.u32 %v3193_v48, %v2989_v29  ;;  %v391_v48 = vld [vmem:[%s3561_s12 + $0x338] sm:$0xff]  ;;  %v398_v29 = vld [vmem:[%s3561_s12 + $0x370] sm:$0xff]  ;;  %v392_v55 = vld [vmem:[%s3561_s12 + $0x340] sm:$0xff]  ;;  %v4235_v63 = vpack.c.bf16 %v397_v25, %v390_v51 }
 0x111   : > { %3007 = vmatmul.msk.bf16.gmra.mxu2 %vm1050_vm0, %v4198_v6  ;;  %1719 = vmatpush.bf16.msrb.mxu1 %v3000_v32  ;;  %v399_v6 = vld [vmem:[%s3561_s12 + $0x378] sm:$0xff]  ;;  %v4237_v61 = vpack.c.bf16 %v398_v29, %v391_v48  ;;  %s2608_s12 = sshll.u32 %s4745_s6, 3 }
 0x112   : > { %1456 = vmatmul.bf16.gmra.mxu3 %v3823_v21  ;;  %1663 = vmatpush.bf16.msrb.mxu0 %v2992_v31  ;;  %4723 = vst [vmem:[#allocation18_spill] sm:$0xff] %v4235_v63  ;;  %v4239_v32 = vpack.c.bf16 %v399_v6, %v392_v55  ;;  %v3191_v6 = vld [vmem:[%s4683_s1 + $0x2e4] sm:$0xf]  ;;  %s4633_s14 = scalar_lea.vmem %s4689_s7, %s2608_s12 }
 0x113   : > { %4724 = vst [vmem:[#allocation19_spill] sm:$0xff] %v4237_v61 }
 0x114   : > { %v1212_v37 = vpop.f32.mrf.mxu2  ;;  %v1116_v38 = vpop.f32.mrf.mxu0  ;;  %4725 = vst [vmem:[#allocation20_spill] sm:$0xff] %v4239_v32 }
 0x115   : > { %v1213_v21 = vadd.f32 %v1212_v37, %v1164_v1  ;;  %v1261_v42 = vpop.f32.mrf.mxu3  ;;  %v1117_v5 = vadd.f32 %v1116_v38, %v3891_v16  ;;  %v1165_v13 = vpop.f32.mrf.mxu1 }
 0x117   : > { %v4227_v7 = vadd.f32 %v1261_v42, %v1213_v21  ;;  %v1166_v34 = vadd.f32 %v1165_v13, %v1117_v5  ;;  %v2981_v13 = vld [vmem:[%s4683_s1 + $0x2e8] sm:$0xf0] }
 0x11c   : > { %v1214_v24 = vpop.f32.mrf.mxu2  ;;  %v1119_v1 = vpop.f32.mrf.mxu0 }
 0x11d   : > { %v1215_v31 = vadd.f32 %v1214_v24, %v1166_v34  ;;  %v1263_v37 = vpop.f32.mrf.mxu3  ;;  %v1120_v21 = vadd.f32 %v1119_v1, %v3891_v16  ;;  %v1168_v38 = vpop.f32.mrf.mxu1  ;;  %v2984_v34 = vor.u32 %v3191_v6, %v2981_v13 }
 0x11f   : > { %v4242_v42 = vadd.f32 %v1263_v37, %v1215_v31  ;;  %v1169_v5 = vadd.f32 %v1168_v38, %v1120_v21  ;;  %1314 = vmatmul.bf16.gmra.mxu0 %v4235_v63 }
 0x120   : > { %1363 = vmatmul.bf16.gmra.mxu1 %v4237_v61  ;;  %1664 = vmatpush.bf16.msrb.mxu0 %v2984_v34 }
 0x121   : > { %3008 = vmatmul.msk.bf16.gmra.mxu2 %vm1050_vm0, %v4239_v32 }
 0x122   : > { %1461 = vmatmul.bf16.gmra.mxu3 %v3861_v58 }
 0x124   : > { %v1217_v51 = vpop.f32.mrf.mxu2  ;;  %v1121_v48 = vpop.f32.mrf.mxu0 }
 0x125   : > { %v1218_v25 = vadd.f32 %v1217_v51, %v1169_v5  ;;  %v1266_v29 = vpop.f32.mrf.mxu3  ;;  %v1122_v55 = vadd.f32 %v1121_v48, %v3891_v16  ;;  %v1170_v24 = vpop.f32.mrf.mxu1  ;;  %v3189_v16 = vld [vmem:[%s4683_s1 + $0x2d4] sm:$0xf]  ;;  %v2973_v5 = vld [vmem:[%s4683_s1 + $0x2d8] sm:$0xf0] }
 0x127   : > { %v4256_v31 = vadd.f32 %v1266_v29, %v1218_v25  ;;  %v1171_v58 = vadd.f32 %v1170_v24, %v1122_v55 }
 0x12c   : > { %v1219_v1 = vpop.f32.mrf.mxu2  ;;  %v1280_v38 = vpop.f32.mrf.mxu0 }
 0x12d   : > { %v1220_v37 = vadd.f32 %v1219_v1, %v1171_v58  ;;  %v1268_v21 = vpop.f32.mrf.mxu3  ;;  %v1281_v32 = vadd.f32 %v1280_v38, %v3921_v62  ;;  %v1329_v61 = vpop.f32.mrf.mxu1  ;;  %v2976_v62 = vor.u32 %v3189_v16, %v2973_v5 }
 0x12f   : > { %v4259_v63 = vadd.f32 %v1268_v21, %v1220_v37  ;;  %v1330_v6 = vadd.f32 %v1329_v61, %v1281_v32  ;;  %1475 = vmatmul.bf16.vlgmr.msra.gmra.mxu0 %v3580_v49 }
 0x130   : > { %1524 = vmatmul.bf16.vlgmr.msra.gmra.mxu1 %v3582_v50  ;;  %1665 = vmatpush.bf16.msrb.mxu0 %v2976_v62 }
 0x131   : > { %1573 = vmatmul.bf16.vlgmr.msra.gmra.mxu2 %v3589_v54 }
 0x132   : > { %1622 = vmatmul.bf16.vlgmr.msra.gmra.mxu3 %v3896_v20 }
 0x134   : > { %v1378_v13 = vpop.f32.mrf.mxu2  ;;  %v1282_v32 = vpop.f32.mrf.mxu0 }
 0x135   : > { %v1379_v61 = vadd.f32 %v1378_v13, %v1330_v6  ;;  %v1283_v49 = vadd.f32 %v1282_v32, %v3936_v35  ;;  %v1331_v50 = vpop.f32.mrf.mxu1  ;;  %v3187_v35 = vld [vmem:[%s4683_s1 + $0x2c4] sm:$0xf] }
 0x137   : > { %v1332_v34 = vadd.f32 %v1331_v50, %v1283_v49  ;;  %v1793_v51 = vmul.f32 0.2, %v1379_v61  ;;  %vm1761_vm1 = vcmp.gt.f32.partialorder %v1379_v61, 0.0 }
 0x139   : > { %v4274_v58 = vsel %vm1761_vm1, %v1379_v61, %v1793_v51 }
 0x13c   : > { %v1380_v54 = vpop.f32.mrf.mxu2  ;;  %v1285_v48 = vpop.f32.mrf.mxu0 }
 0x13d   : > { %v1381_v25 = vadd.f32 %v1380_v54, %v1332_v34  ;;  %v1286_v29 = vadd.f32 %v1285_v48, %v3956_v0  ;;  %v1334_v55 = vpop.f32.mrf.mxu1  ;;  %v2965_v0 = vld [vmem:[%s4683_s1 + $0x2c8] sm:$0xf0]  ;;  %v2957_v34 = vld [vmem:[%s4683_s1 + $0x2b8] sm:$0xf0] }
 0x13f   : > { %vm1763_vm2 = vcmp.gt.f32.partialorder %v1381_v25, 0.0  ;;  %v1795_v24 = vmul.f32 0.2, %v1381_v25  ;;  %v1335_v20 = vadd.f32 %v1334_v55, %v1286_v29  ;;  %1480 = vmatmul.bf16.gmra.mxu0 %v3617_v8  ;;  %v2968_v8 = vor.u32 %v3187_v35, %v2965_v0 }
 0x140   : > { %1529 = vmatmul.bf16.gmra.mxu1 %v3619_v9 }
 0x141   : > { %v4276_v1 = vsel %vm1763_vm2, %v1381_v25, %v1795_v24  ;;  %1578 = vmatmul.bf16.gmra.mxu2 %v3621_v10  ;;  %1666 = vmatpush.bf16.msrb.mxu0 %v2968_v8  ;;  %v4308_v24 = vpop.f32.mrf.mxu3 }
 0x142   : > { %v1857_v37 = vpack.c.bf16 %v4276_v1, %v4274_v58  ;;  %1627 = vmatmul.bf16.gmra.mxu3 %v3929_v15 }
 0x144   : > { %v1383_v21 = vpop.f32.mrf.mxu2  ;;  %v1287_v9 = vpop.f32.mrf.mxu0 }
 0x145   : > { %v1384_v38 = vadd.f32 %v1383_v21, %v1335_v20  ;;  %v1288_v10 = vadd.f32 %v1287_v9, %v3971_v52  ;;  %v1336_v6 = vpop.f32.mrf.mxu1  ;;  %v3185_v52 = vld [vmem:[%s4683_s1 + $0x2b4] sm:$0xf] }
 0x146   : > { %v2960_v51 = vor.u32 %v3185_v52, %v2957_v34 }
 0x147   : > { %v1337_v16 = vadd.f32 %v1336_v6, %v1288_v10  ;;  %v1797_v62 = vmul.f32 0.2, %v1384_v38  ;;  %vm1765_vm3 = vcmp.gt.f32.partialorder %v1384_v38, 0.0  ;;  %v2949_v10 = vld [vmem:[%s4683_s1 + $0x2a8] sm:$0xf0] }
 0x148   : > { %1667 = vmatpush.bf16.msrb.mxu0 %v2960_v51 }
 0x149   : > { %v4300_v54 = vsel %vm1765_vm3, %v1384_v38, %v1797_v62  ;;  %v4327_v62 = vpop.f32.mrf.mxu3 }
 0x14c   : > { %v1385_v5 = vpop.f32.mrf.mxu2  ;;  %v1290_v61 = vpop.f32.mrf.mxu0 }
 0x14d   : > { %v1386_v13 = vadd.f32 %v1385_v5, %v1337_v16  ;;  %v1291_v32 = vadd.f32 %v1290_v61, %v3991_v14  ;;  %v1339_v49 = vpop.f32.mrf.mxu1 }
 0x14f   : > { %vm1767_vm4 = vcmp.gt.f32.partialorder %v1386_v13, 0.0  ;;  %v1799_v50 = vmul.f32 0.2, %v1386_v13  ;;  %v1340_v15 = vadd.f32 %v1339_v49, %v1291_v32  ;;  %1485 = vmatmul.bf16.gmra.mxu0 %v3649_v26 }
 0x150   : > { %1534 = vmatmul.bf16.gmra.mxu1 %v3651_v27 }
 0x151   : > { %1583 = vmatmul.bf16.gmra.mxu2 %v3653_v28  ;;  %v4302_v14 = vsel %vm1767_vm4, %v1386_v13, %v1799_v50 }
 0x152   : > { %1632 = vmatmul.bf16.gmra.mxu3 %v3964_v19  ;;  %v1859_v26 = vpack.c.bf16 %v4302_v14, %v4300_v54 }
 0x154   : > { %v1388_v27 = vpop.f32.mrf.mxu2  ;;  %v1292_v25 = vpop.f32.mrf.mxu0 }
 0x155   : > { %v1389_v28 = vadd.f32 %v1388_v27, %v1340_v15  ;;  %v1293_v48 = vadd.f32 %v1292_v25, %v4006_v11  ;;  %v1341_v29 = vpop.f32.mrf.mxu1  ;;  %v3183_v11 = vld [vmem:[%s4683_s1 + $0x2a4] sm:$0xf]  ;;  %v4331_v27 = vpop.f32.mrf.mxu3  ;;  %v2941_v25 = vld [vmem:[%s4683_s1 + $0x298] sm:$0xf0] }
 0x156   : > { %v2952_v16 = vor.u32 %v3183_v11, %v2949_v10 }
 0x157   : > { %v1342_v55 = vadd.f32 %v1341_v29, %v1293_v48  ;;  %v1801_v35 = vmul.f32 0.2, %v1389_v28  ;;  %vm1769_vm5 = vcmp.gt.f32.partialorder %v1389_v28, 0.0 }
 0x158   : > { %1668 = vmatpush.bf16.msrb.mxu0 %v2952_v16 }
 0x159   : > { %v4320_v6 = vsel %vm1769_vm5, %v1389_v28, %v1801_v35 }
 0x15c   : > { %v1390_v20 = vpop.f32.mrf.mxu2  ;;  %v1295_v8 = vpop.f32.mrf.mxu0 }
 0x15d   : > { %v1391_v0 = vadd.f32 %v1390_v20, %v1342_v55  ;;  %v1296_v19 = vadd.f32 %v1295_v8, %v4026_v53  ;;  %v1344_v21 = vpop.f32.mrf.mxu1  ;;  %v3203_v55 = vld [vmem:[%s4685_s3 + $0x30] sm:$0xff] }
 0x15f   : > { %vm1771_vm6 = vcmp.gt.f32.partialorder %v1391_v0, 0.0  ;;  %v1803_v38 = vmul.f32 0.2, %v1391_v0  ;;  %v1345_v9 = vadd.f32 %v1344_v21, %v1296_v19  ;;  %1490 = vmatmul.bf16.gmra.mxu0 %v3681_v45  ;;  %v4359_v21 = vpop.f32.mrf.mxu3 }
 0x160   : > { %1539 = vmatmul.bf16.gmra.mxu1 %v3683_v46 }
 0x161   : > { %1588 = vmatmul.bf16.gmra.mxu2 %v3685_v47  ;;  %v4322_v53 = vsel %vm1771_vm6, %v1391_v0, %v1803_v38 }
 0x162   : > { %1637 = vmatmul.bf16.gmra.mxu3 %v3999_v44  ;;  %v1861_v45 = vpack.c.bf16 %v4322_v53, %v4320_v6 }
 0x164   : > { %v1393_v46 = vpop.f32.mrf.mxu2  ;;  %v1297_v5 = vpop.f32.mrf.mxu0 }
 0x165   : > { %v1394_v47 = vadd.f32 %v1393_v46, %v1345_v9  ;;  %v1298_v13 = vadd.f32 %v1297_v5, %v4041_v43  ;;  %v1346_v61 = vpop.f32.mrf.mxu1  ;;  %v3204_v43 = vld [vmem:[%s4685_s3 + $0x38] sm:$0xff]  ;;  %v3201_v9 = vld [vmem:[%s4685_s3 + $0x20] sm:$0xff] }
 0x166   : > { %2005 = vmatpush.bf16.msrb.mxu2 %v3204_v43 }
 0x167   : > { %v1347_v32 = vadd.f32 %v1346_v61, %v1298_v13  ;;  %v1805_v50 = vmul.f32 0.2, %v1394_v47  ;;  %vm1773_vm7 = vcmp.gt.f32.partialorder %v1394_v47, 0.0  ;;  %v3200_v13 = vld [vmem:[%s4685_s3 + $0x18] sm:$0xff]  ;;  %v3179_v61 = vld [vmem:[%s4683_s1 + $0x284] sm:$0xf] }
 0x169   : > { %v4345_v48 = vsel %vm1773_vm7, %v1394_v47, %v1805_v50 }
 0x16a   : > { %2006 = vmatpush.bf16.msrb.mxu2 %v3203_v55 }
 0x16c   : > { %v1395_v49 = vpop.f32.mrf.mxu2  ;;  %v1300_v52 = vpop.f32.mrf.mxu0 }
 0x16d   : > { %v1396_v15 = vadd.f32 %v1395_v49, %v1347_v32  ;;  %v1301_v44 = vadd.f32 %v1300_v52, %v4085_v18  ;;  %v1349_v34 = vpop.f32.mrf.mxu1  ;;  %v3181_v18 = vld [vmem:[%s4683_s1 + $0x294] sm:$0xf] }
 0x16f   : > { %vm1775_vm8 = vcmp.gt.f32.partialorder %v1396_v15, 0.0  ;;  %v1807_v51 = vmul.f32 0.2, %v1396_v15  ;;  %v1350_v28 = vadd.f32 %v1349_v34, %v1301_v44  ;;  %1495 = vmatmul.bf16.gmra.mxu0 %v3713_v2  ;;  %v2944_v2 = vor.u32 %v3181_v18, %v2941_v25  ;;  %v3197_v18 = vld [vmem:[%s4685_s3] sm:$0xff] }
 0x170   : > { %1544 = vmatmul.bf16.gmra.mxu1 %v3715_v3 }
 0x171   : > { %1593 = vmatmul.bf16.gmra.mxu2 %v3717_v4  ;;  %v4347_v29 = vsel %vm1775_vm8, %v1396_v15, %v1807_v51  ;;  %1669 = vmatpush.bf16.msrb.mxu0 %v2944_v2  ;;  %v3199_v15 = vld [vmem:[%s4685_s3 + $0x10] sm:$0xff] }
 0x172   : > { %1642 = vmatmul.bf16.gmra.mxu3 %v4034_v33  ;;  %v1863_v3 = vpack.c.bf16 %v4347_v29, %v4345_v48  ;;  %v3202_v33 = vld [vmem:[%s4685_s3 + $0x28] sm:$0xff] }
 0x173   : > { %2007 = vmatpush.bf16.msrb.mxu2 %v3202_v33 }
 0x174   : > { %v1398_v4 = vpop.f32.mrf.mxu2  ;;  %v1302_v35 = vpop.f32.mrf.mxu0 }
 0x175   : > { %v1399_v20 = vadd.f32 %v1398_v4, %v1350_v28  ;;  %v1303_v0 = vadd.f32 %v1302_v35, %v4124_v56  ;;  %v1351_v8 = vpop.f32.mrf.mxu1  ;;  %v3198_v28 = vld [vmem:[%s4685_s3 + $0x8] sm:$0xff] }
 0x177   : > { %v1352_v19 = vadd.f32 %v1351_v8, %v1303_v0  ;;  %v1809_v11 = vmul.f32 0.2, %v1399_v20  ;;  %vm1777_vm9 = vcmp.gt.f32.partialorder %v1399_v20, 0.0  ;;  %2008 = vmatpush.bf16.msrb.mxu2 %v3201_v9 }
 0x179   : > { %v4377_v32 = vsel %vm1777_vm9, %v1399_v20, %v1809_v11 }
 0x17b   : > { %2009 = vmatpush.bf16.msrb.mxu2 %v3200_v13 }
 0x17c   : > { %v1400_v38 = vpop.f32.mrf.mxu2  ;;  %v1305_v16 = vpop.f32.mrf.mxu0 }
 0x17d   : > { %v1401_v10 = vadd.f32 %v1400_v38, %v1352_v19  ;;  %v1306_v56 = vadd.f32 %v1305_v16, %v4168_v57  ;;  %v1354_v46 = vpop.f32.mrf.mxu1  ;;  %v2933_v57 = vld [vmem:[%s4683_s1 + $0x288] sm:$0xf0] }
 0x17f   : > { %vm1779_vm10 = vcmp.gt.f32.partialorder %v1401_v10, 0.0  ;;  %v1811_v47 = vmul.f32 0.2, %v1401_v10  ;;  %v1355_v5 = vadd.f32 %v1354_v46, %v1306_v56  ;;  %1500 = vmatmul.bf16.gmra.mxu0 %v3769_v39  ;;  %v2936_v39 = vor.u32 %v3179_v61, %v2933_v57  ;;  %2010 = vmatpush.bf16.msrb.mxu2 %v3199_v15  ;;  %v4726_v61 = vld [vmem:[#allocation3_spill] sm:$0xff] }
 0x180   : > { %1549 = vmatmul.bf16.gmra.mxu1 %v3771_v40 }
 0x181   : > { %1598 = vmatmul.bf16.gmra.mxu2 %v3773_v41  ;;  %v4379_v49 = vsel %vm1779_vm10, %v1401_v10, %v1811_v47  ;;  %v4384_v41 = vpop.f32.mrf.mxu3  ;;  %1670 = vmatpush.bf16.msrb.mxu0 %v2936_v39 }
 0x182   : > { %1647 = vmatmul.bf16.gmra.mxu3 %v4111_v17  ;;  %v1865_v40 = vpack.c.bf16 %v4379_v49, %v4377_v32  ;;  %v3206_v32 = vld [vmem:[%s4685_s3 + $0x48] sm:$0xff] }
 0x183   : > { %2011 = vmatpush.bf16.msrb.mxu2 %v3198_v28 }
 0x184   : > { %v1403_v50 = vpop.f32.mrf.mxu2  ;;  %v1307_v44 = vpop.f32.mrf.mxu0 }
 0x185   : > { %v1404_v52 = vadd.f32 %v1403_v50, %v1355_v5  ;;  %v1308_v34 = vadd.f32 %v1307_v44, %v4207_v36  ;;  %v1356_v51 = vpop.f32.mrf.mxu1 }
 0x187   : > { %v1357_v17 = vadd.f32 %v1356_v51, %v1308_v34  ;;  %v1813_v25 = vmul.f32 0.2, %v1404_v52  ;;  %vm1781_vm11 = vcmp.gt.f32.partialorder %v1404_v52, 0.0  ;;  %2012 = vmatpush.bf16.msrb.mxu2 %v3197_v18 }
 0x189   : > { %v4396_v55 = vpop.f32.mrf.mxu3  ;;  %v4402_v8 = vsel %vm1781_vm11, %v1404_v52, %v1813_v25 }
 0x18c   : > { %v1405_v43 = vpop.f32.mrf.mxu2  ;;  %v1310_v4 = vpop.f32.mrf.mxu0 }
 0x18d   : > { %v1406_v2 = vadd.f32 %v1405_v43, %v1357_v17  ;;  %v1311_v36 = vadd.f32 %v1310_v4, %v4227_v7  ;;  %v1359_v20 = vpop.f32.mrf.mxu1 }
 0x18f   : > { %vm1783_vm12 = vcmp.gt.f32.partialorder %v1406_v2, 0.0  ;;  %v1815_v35 = vmul.f32 0.2, %v1406_v2  ;;  %v1360_v0 = vadd.f32 %v1359_v20, %v1311_v36  ;;  %1505 = vmatmul.bf16.gmra.mxu0 %v3825_v22 }
 0x190   : > { %1554 = vmatmul.bf16.gmra.mxu1 %v3827_v23 }
 0x191   : > { %1603 = vmatmul.bf16.gmra.mxu2 %v3835_v30  ;;  %v4404_v19 = vsel %vm1783_vm12, %v1406_v2, %v1815_v35  ;;  %v4410_v22 = vpop.f32.mrf.mxu3 }
 0x192   : > { %1652 = vmatmul.bf16.gmra.mxu3 %v4194_v12  ;;  %v1867_v7 = vpack.c.bf16 %v4404_v19, %v4402_v8  ;;  %v4741_v8 = vld [vmem:[#allocation17_spill] sm:$0xff] }
 0x194   : > { %v1408_v33 = vpop.f32.mrf.mxu2  ;;  %v1312_v9 = vpop.f32.mrf.mxu0 }
 0x195   : > { %v1409_v38 = vadd.f32 %v1408_v33, %v1360_v0  ;;  %v1313_v11 = vadd.f32 %v1312_v9, %v4242_v42  ;;  %v1361_v10 = vpop.f32.mrf.mxu1  ;;  %v3212_v42 = vld [vmem:[%s4685_s3 + $0x78] sm:$0xff]  ;;  %v4728_v33 = vld [vmem:[#allocation4_spill] sm:$0xff] }
 0x196   : > { %2054 = vmatpush.bf16.msrb.mxu3 %v3212_v42 }
 0x197   : > { %v1362_v23 = vadd.f32 %v1361_v10, %v1313_v11  ;;  %v1817_v30 = vmul.f32 0.2, %v1409_v38  ;;  %vm1785_vm13 = vcmp.gt.f32.partialorder %v1409_v38, 0.0 }
 0x199   : > { %v4419_v57 = vsel %vm1785_vm13, %v1409_v38, %v1817_v30  ;;  %v4423_v50 = vpop.f32.mrf.mxu3  ;;  %v4729_v38 = vld [vmem:[#allocation5_spill] sm:$0xff] }
 0x19c   : > { %v1410_v16 = vpop.f32.mrf.mxu2  ;;  %v1315_v46 = vpop.f32.mrf.mxu0 }
 0x19d   : > { %v1411_v56 = vadd.f32 %v1410_v16, %v1362_v23  ;;  %v1316_v47 = vadd.f32 %v1315_v46, %v4256_v31  ;;  %v1364_v12 = vpop.f32.mrf.mxu1  ;;  %v4727_v31 = vld [vmem:[#allocation18_spill] sm:$0xff] }
 0x19f   : > { %vm1787_vm14 = vcmp.gt.f32.partialorder %v1411_v56, 0.0  ;;  %v1819_v5 = vmul.f32 0.2, %v1411_v56  ;;  %v1365_v13 = vadd.f32 %v1364_v12, %v1316_v47  ;;  %1510 = vmatmul.bf16.gmra.mxu0 %v3863_v59 }
 0x1a0   : > { %1559 = vmatmul.bf16.gmra.mxu1 %v3865_v60  ;;  %v3289_v60 = vld [vmem:[%s4684_s2] sm:$0x3] }
 0x1a1   : > { %1608 = vmatmul.bf16.gmra.mxu2 %v4726_v61  ;;  %v4421_v39 = vsel %vm1787_vm14, %v1411_v56, %v1819_v5  ;;  %v4431_v34 = vperm.slane %v3289_v60, 1  ;;  %v1447_v1 = vpop.f32.mrf.mxu3 }
 0x1a2   : > { %1657 = vmatmul.bf16.gmra.mxu3 %v4727_v31  ;;  %v1869_v15 = vpack.c.bf16 %v4421_v39, %v4419_v57  ;;  %v4730_v31 = vld [vmem:[#allocation6_spill] sm:$0xff] }
 0x1a3   : > { %v1428_v43 = vadd.f32 %v4308_v24, %v4431_v34  ;;  %v1430_v10 = vadd.f32 %v4327_v62, %v4431_v34  ;;  %v1433_v58 = vadd.f32 %v4331_v27, %v4431_v34  ;;  %v3210_v62 = vld [vmem:[%s4685_s3 + $0x68] sm:$0xff]  ;;  %v1435_v27 = vadd.f32 %v4359_v21, %v4431_v34 }
 0x1a4   : > { %v1413_v59 = vpop.f32.mrf.mxu2  ;;  %v1317_v44 = vpop.f32.mrf.mxu0  ;;  %v4732_v21 = vld [vmem:[#allocation8_spill] sm:$0xff] }
 0x1a5   : > { %v1414_v52 = vadd.f32 %v1413_v59, %v1365_v13  ;;  %v1318_v51 = vadd.f32 %v1317_v44, %v4259_v63  ;;  %v1366_v17 = vpop.f32.mrf.mxu1  ;;  %v3211_v63 = vld [vmem:[%s4685_s3 + $0x70] sm:$0xff]  ;;  %v4731_v59 = vld [vmem:[#allocation7_spill] sm:$0xff] }
 0x1a6   : > { %2055 = vmatpush.bf16.msrb.mxu3 %v3211_v63 }
 0x1a7   : > { %v1367_v28 = vadd.f32 %v1366_v17, %v1318_v51  ;;  %v1821_v25 = vmul.f32 0.2, %v1414_v52  ;;  %vm1789_vm15 = vcmp.gt.f32.partialorder %v1414_v52, 0.0 }
 0x1a9   : > { %v4445_v24 = vsel %vm1789_vm15, %v1414_v52, %v1821_v25  ;;  %v1449_v44 = vpop.f32.mrf.mxu3 }
 0x1aa   : > { %2056 = vmatpush.bf16.msrb.mxu3 %v3210_v62 }
 0x1ac   : > { %v1415_v18 = vpop.f32.mrf.mxu2  ;;  %v1476_v4 = vpop.f32.mrf.mxu0 }
 0x1ad   : > { %v1416_v2 = vadd.f32 %v1415_v18, %v1367_v28  ;;  %v1477_v36 = vadd.f32 %v1476_v4, %v1428_v43  ;;  %v1525_v20 = vpop.f32.mrf.mxu1  ;;  %v1438_v18 = vadd.f32 %v4384_v41, %v4431_v34  ;;  %v1440_v41 = vadd.f32 %v4396_v55, %v4431_v34  ;;  %v3208_v55 = vld [vmem:[%s4685_s3 + $0x58] sm:$0xff] }
 0x1af   : > { %vm1791_vm1 = vcmp.gt.f32.partialorder %v1416_v2, 0.0  ;;  %v1823_v35 = vmul.f32 0.2, %v1416_v2  ;;  %v1526_v0 = vadd.f32 %v1525_v20, %v1477_v36  ;;  %1671 = vmatmul.bf16.vlgmr.msrb.gmra.mxu0 %v4728_v33  ;;  %v3209_v20 = vld [vmem:[%s4685_s3 + $0x60] sm:$0xff] }
 0x1b0   : > { %3009 = vmatmul.msk.bf16.vlgmr.msrb.gmra.mxu1 %vm1050_vm0, %v4729_v38  ;;  %2057 = vmatpush.bf16.msrb.mxu3 %v3209_v20 }
 0x1b1   : > { %2013 = vmatmul.bf16.vlgmr.msrb.gmra.mxu2 %v1857_v37  ;;  %v4447_v9 = vsel %vm1791_vm1, %v1416_v2, %v1823_v35  ;;  %v1452_v4 = vpop.f32.mrf.mxu3  ;;  %v4733_v35 = vld [vmem:[#allocation9_spill] sm:$0xff] }
 0x1b2   : > { %v1871_v11 = vpack.c.bf16 %v4447_v9, %v4445_v24  ;;  %v1453_v20 = vadd.f32 %v1452_v4, %v4431_v34 }
 0x1b4   : > { %v1574_v23 = vpop.f32.mrf.mxu2  ;;  %v1478_v30 = vpop.f32.mrf.mxu0  ;;  %2058 = vmatpush.bf16.msrb.mxu3 %v3208_v55  ;;  %v4740_v55 = vld [vmem:[#allocation16_spill] sm:$0xff] }
 0x1b5   : > { %v4453_v16 = vadd.f32 %v1574_v23, %v1526_v0  ;;  %v1479_v56 = vadd.f32 %v1478_v30, %v1430_v10  ;;  %v1527_v46 = vpop.f32.mrf.mxu1 }
 0x1b7   : > { %v1528_v47 = vadd.f32 %v1527_v46, %v1479_v56  ;;  %v1443_v56 = vadd.f32 %v4410_v22, %v4431_v34 }
 0x1b9   : > { %v1454_v30 = vpop.f32.mrf.mxu3 }
 0x1bc   : > { %v1576_v37 = vpop.f32.mrf.mxu2  ;;  %v1481_v5 = vpop.f32.mrf.mxu0 }
 0x1bd   : > { %v4457_v12 = vadd.f32 %v1576_v37, %v1528_v47  ;;  %v1482_v13 = vadd.f32 %v1481_v5, %v1433_v58  ;;  %v1530_v42 = vpop.f32.mrf.mxu1  ;;  %v4734_v37 = vld [vmem:[#allocation10_spill] sm:$0xff]  ;;  %v4735_v5 = vld [vmem:[#allocation11_spill] sm:$0xff] }
 0x1bf   : > { %v1531_v61 = vadd.f32 %v1530_v42, %v1482_v13  ;;  %1676 = vmatmul.bf16.gmra.mxu0 %v4730_v31  ;;  %v1445_v13 = vadd.f32 %v4423_v50, %v4431_v34  ;;  %v3207_v50 = vld [vmem:[%s4685_s3 + $0x50] sm:$0xff] }
 0x1c0   : > { %3010 = vmatmul.msk.bf16.gmra.mxu1 %vm1050_vm0, %v4731_v59  ;;  %2059 = vmatpush.bf16.msrb.mxu3 %v3207_v50 }
 0x1c1   : > { %2018 = vmatmul.bf16.gmra.mxu2 %v1859_v26  ;;  %v1457_v22 = vpop.f32.mrf.mxu3 }
 0x1c4   : > { %v1579_v52 = vpop.f32.mrf.mxu2  ;;  %v1483_v51 = vpop.f32.mrf.mxu0  ;;  %2060 = vmatpush.bf16.msrb.mxu3 %v3206_v32 }
 0x1c5   : > { %v4470_v60 = vadd.f32 %v1579_v52, %v1531_v61  ;;  %v1484_v17 = vadd.f32 %v1483_v51, %v1435_v27  ;;  %v1532_v28 = vpop.f32.mrf.mxu1  ;;  %v1448_v52 = vadd.f32 %v1447_v1, %v4431_v34  ;;  %v1450_v1 = vadd.f32 %v1449_v44, %v4431_v34 }
 0x1c6   : > { %v1455_v44 = vadd.f32 %v1454_v30, %v4431_v34 }
 0x1c7   : > { %v1533_v43 = vadd.f32 %v1532_v28, %v1484_v17 }
 0x1c9   : > { %v1459_v17 = vpop.f32.mrf.mxu3 }
 0x1ca   : > { %v1460_v19 = vadd.f32 %v1459_v17, %v4431_v34 }
 0x1cc   : > { %v1581_v25 = vpop.f32.mrf.mxu2  ;;  %v1486_v54 = vpop.f32.mrf.mxu0 }
 0x1cd   : > { %v4474_v2 = vadd.f32 %v1581_v25, %v1533_v43  ;;  %v1487_v14 = vadd.f32 %v1486_v54, %v1438_v18  ;;  %v1535_v26 = vpop.f32.mrf.mxu1  ;;  %v4736_v18 = vld [vmem:[#allocation12_spill] sm:$0xff]  ;;  %v4737_v25 = vld [vmem:[#allocation13_spill] sm:$0xff] }
 0x1cf   : > { %v1536_v36 = vadd.f32 %v1535_v26, %v1487_v14  ;;  %1681 = vmatmul.bf16.gmra.mxu0 %v4732_v21 }
 0x1d0   : > { %3011 = vmatmul.msk.bf16.gmra.mxu1 %vm1050_vm0, %v4733_v35 }
 0x1d1   : > { %2023 = vmatmul.bf16.gmra.mxu2 %v1861_v45 }
 0x1d4   : > { %v1584_v0 = vpop.f32.mrf.mxu2  ;;  %v1488_v63 = vpop.f32.mrf.mxu0 }
 0x1d5   : > { %v4487_v33 = vadd.f32 %v1584_v0, %v1536_v36  ;;  %v1489_v38 = vadd.f32 %v1488_v63, %v1440_v41  ;;  %v1537_v10 = vpop.f32.mrf.mxu1  ;;  %v1462_v36 = vpop.f32.mrf.mxu3 }
 0x1d7   : > { %v1538_v23 = vadd.f32 %v1537_v10, %v1489_v38  ;;  %v4738_v38 = vld [vmem:[#allocation14_spill] sm:$0xff] }
 0x1dc   : > { %v1586_v46 = vpop.f32.mrf.mxu2  ;;  %v1491_v6 = vpop.f32.mrf.mxu0 }
 0x1dd   : > { %v4491_v47 = vadd.f32 %v1586_v46, %v1538_v23  ;;  %v1492_v53 = vadd.f32 %v1491_v6, %v1443_v56  ;;  %v1540_v45 = vpop.f32.mrf.mxu1  ;;  %v1464_v49 = vpop.f32.mrf.mxu3  ;;  %v1458_v46 = vadd.f32 %v1457_v22, %v4431_v34 }
 0x1df   : > { %v1541_v58 = vadd.f32 %v1540_v45, %v1492_v53  ;;  %1686 = vmatmul.bf16.gmra.mxu0 %v4734_v37 }
 0x1e0   : > { %3012 = vmatmul.msk.bf16.gmra.mxu1 %vm1050_vm0, %v4735_v5 }
 0x1e1   : > { %2028 = vmatmul.bf16.gmra.mxu2 %v1863_v3 }
 0x1e4   : > { %v1589_v42 = vpop.f32.mrf.mxu2  ;;  %v1493_v31 = vpop.f32.mrf.mxu0 }
 0x1e5   : > { %v4504_v61 = vadd.f32 %v1589_v42, %v1541_v58  ;;  %v1494_v62 = vadd.f32 %v1493_v31, %v1445_v13  ;;  %v1542_v59 = vpop.f32.mrf.mxu1  ;;  %v1623_v6 = vpop.f32.mrf.mxu3  ;;  %v1463_v31 = vadd.f32 %v1462_v36, %v4431_v34 }
 0x1e7   : > { %v1543_v27 = vadd.f32 %v1542_v59, %v1494_v62 }
 0x1ec   : > { %v1591_v51 = vpop.f32.mrf.mxu2  ;;  %v1496_v48 = vpop.f32.mrf.mxu0 }
 0x1ed   : > { %v4507_v28 = vadd.f32 %v1591_v51, %v1543_v27  ;;  %v1497_v29 = vadd.f32 %v1496_v48, %v1448_v52  ;;  %v1545_v3 = vpop.f32.mrf.mxu1  ;;  %v1625_v30 = vpop.f32.mrf.mxu3  ;;  %v4743_v52 = vld [vmem:[#allocation20_spill] sm:$0xff]  ;;  %v1465_v51 = vadd.f32 %v1464_v49, %v4431_v34 }
 0x1ef   : > { %v4509_v43 = vadd.f32 %v1545_v3, %v1497_v29  ;;  %1691 = vmatmul.bf16.gmra.mxu0 %v4736_v18 }
 0x1f0   : > { %3013 = vmatmul.msk.bf16.gmra.mxu1 %vm1050_vm0, %v4737_v25  ;;  %v1624_v25 = vadd.f32 %v1623_v6, %v4453_v16 }
 0x1f1   : > { %2033 = vmatmul.bf16.gmra.mxu2 %v1865_v40  ;;  %v4739_v40 = vld [vmem:[#allocation15_spill] sm:$0xff] }
 0x1f4   : > { %v1498_v54 = vpop.f32.mrf.mxu0 }
 0x1f5   : > { %v1499_v14 = vadd.f32 %v1498_v54, %v1450_v1  ;;  %v1547_v26 = vpop.f32.mrf.mxu1  ;;  %v1628_v57 = vpop.f32.mrf.mxu3 }
 0x1f6   : > { %v1629_v16 = vadd.f32 %v1628_v57, %v4470_v60 }
 0x1f7   : > { %v4521_v21 = vadd.f32 %v1547_v26, %v1499_v14  ;;  %v1626_v26 = vadd.f32 %v1625_v30, %v4457_v12 }
 0x1fc   : > { %v1501_v35 = vpop.f32.mrf.mxu0 }
 0x1fd   : > { %v1502_v41 = vadd.f32 %v1501_v35, %v1453_v20  ;;  %v1550_v0 = vpop.f32.mrf.mxu1  ;;  %v1630_v18 = vpop.f32.mrf.mxu3 }
 0x1fe   : > { %v1631_v12 = vadd.f32 %v1630_v18, %v4474_v2 }
 0x1ff   : > { %v4524_v63 = vadd.f32 %v1550_v0, %v1502_v41  ;;  %1696 = vmatmul.bf16.gmra.mxu0 %v4738_v38 }
 0x200   : > { %3014 = vmatmul.msk.bf16.gmra.mxu1 %vm1050_vm0, %v4739_v40 }
 0x201   : > { %2038 = vmatmul.bf16.gmra.mxu2 %v1867_v7  ;;  %v3205_v7 = vld [vmem:[%s4685_s3 + $0x40] sm:$0xff] }
 0x202   : > { %2061 = vmatpush.bf16.msrb.mxu3 %v3205_v7 }
 0x204   : > { %v1503_v4 = vpop.f32.mrf.mxu0 }
 0x205   : > { %v1504_v10 = vadd.f32 %v1503_v4, %v1455_v44  ;;  %v1552_v23 = vpop.f32.mrf.mxu1  ;;  %v1633_v14 = vpop.f32.mrf.mxu3 }
 0x206   : > { %v1634_v60 = vadd.f32 %v1633_v14, %v4487_v33 }
 0x207   : > { %v4536_v56 = vadd.f32 %v1552_v23, %v1504_v10 }
 0x20c   : > { %v1506_v53 = vpop.f32.mrf.mxu0 }
 0x20d   : > { %v1507_v45 = vadd.f32 %v1506_v53, %v1458_v46  ;;  %v1555_v58 = vpop.f32.mrf.mxu1  ;;  %v1635_v38 = vpop.f32.mrf.mxu3 }
 0x20f   : > { %v4539_v37 = vadd.f32 %v1555_v58, %v1507_v45  ;;  %1701 = vmatmul.bf16.gmra.mxu0 %v4740_v55 }
 0x210   : > { %3015 = vmatmul.msk.bf16.gmra.mxu1 %vm1050_vm0, %v4741_v8 }
 0x211   : > { %2043 = vmatmul.bf16.gmra.mxu2 %v1869_v15  ;;  %v4742_v15 = vld [vmem:[#allocation19_spill] sm:$0xff] }
 0x214   : > { %v1508_v5 = vpop.f32.mrf.mxu0 }
 0x215   : > { %v1509_v22 = vadd.f32 %v1508_v5, %v1460_v19  ;;  %v1557_v13 = vpop.f32.mrf.mxu1  ;;  %v1638_v6 = vpop.f32.mrf.mxu3 }
 0x216   : > { %v1594_v5 = vpop.f32.mrf.mxu2 }
 0x217   : > { %v4551_v42 = vadd.f32 %v1557_v13, %v1509_v22  ;;  %v1636_v13 = vadd.f32 %v1635_v38, %v4491_v47 }
 0x21c   : > { %v1511_v62 = vpop.f32.mrf.mxu0 }
 0x21d   : > { %v1512_v59 = vadd.f32 %v1511_v62, %v1463_v31  ;;  %v1560_v27 = vpop.f32.mrf.mxu1  ;;  %v1640_v22 = vpop.f32.mrf.mxu3 }
 0x21f   : > { %v4554_v39 = vadd.f32 %v1560_v27, %v1512_v59  ;;  %1706 = vmatmul.bf16.gmra.mxu0 %v4742_v15 }
 0x220   : > { %3016 = vmatmul.msk.bf16.gmra.mxu1 %vm1050_vm0, %v4743_v52  ;;  %v1596_v52 = vpop.f32.mrf.mxu2 }
 0x221   : > { %2048 = vmatmul.bf16.gmra.mxu2 %v1871_v11 }
 0x224   : > { %v1513_v17 = vpop.f32.mrf.mxu0 }
 0x225   : > { %v1514_v48 = vadd.f32 %v1513_v17, %v1465_v51  ;;  %v1562_v29 = vpop.f32.mrf.mxu1  ;;  %v1643_v17 = vpop.f32.mrf.mxu3 }
 0x227   : > { %v4563_v3 = vadd.f32 %v1562_v29, %v1514_v48 }
 0x22c   : > { %v1672_v50 = vpop.f32.mrf.mxu0 }
 0x22d   : > { %v1721_v1 = vpop.f32.mrf.mxu1  ;;  %v1673_v54 = vadd.f32 %v1672_v50, %v1624_v25  ;;  %v1639_v50 = vadd.f32 %v1638_v6, %v4504_v61 }
 0x22f   : > { %v1722_v36 = vadd.f32 %v1721_v1, %v1673_v54  ;;  %v1641_v1 = vadd.f32 %v1640_v22, %v4507_v28  ;;  %v1599_v54 = vpop.f32.mrf.mxu2 }
 0x231   : > { %v1794_v11 = vmul.f32 0.2, %v1722_v36  ;;  %vm1762_vm0 = vcmp.gt.f32.partialorder %v1722_v36, 0.0 }
 0x233   : > { %v1826_v41 = vsel %vm1762_vm0, %v1722_v36, %v1794_v11 }
 0x234   : > { %v1674_v20 = vpop.f32.mrf.mxu0 }
 0x235   : > { %v1675_v24 = vadd.f32 %v1674_v20, %v1626_v26  ;;  %v1723_v9 = vpop.f32.mrf.mxu1  ;;  %v1645_v26 = vpop.f32.mrf.mxu3 }
 0x237   : > { %v1724_v34 = vadd.f32 %v1723_v9, %v1675_v24 }
 0x239   : > { %vm1764_vm2 = vcmp.gt.f32.partialorder %v1724_v34, 0.0  ;;  %v1796_v35 = vmul.f32 0.2, %v1724_v34 }
 0x23b   : > { %v1828_v0 = vsel %vm1764_vm2, %v1724_v34, %v1796_v35  ;;  %v1595_v34 = vadd.f32 %v1594_v5, %v4509_v43 }
 0x23c   : > { %v1858_v32 = vpack.c.bf16 %v1828_v0, %v1826_v41  ;;  %v1677_v49 = vpop.f32.mrf.mxu0 }
 0x23d   : > { %v1726_v40 = vpop.f32.mrf.mxu1  ;;  %v1678_v44 = vadd.f32 %v1677_v49, %v1629_v16  ;;  %v1601_v49 = vpop.f32.mrf.mxu2 }
 0x23e   : > { %2062 = vmatmul.bf16.vlgmr.msrb.gmra.mxu3 %v1858_v32  ;;  %v1644_v32 = vadd.f32 %v1643_v17, %v1595_v34  ;;  %v1648_v16 = vpop.f32.mrf.mxu3  ;;  %v1602_v5 = vadd.f32 %v1601_v49, %v4536_v56 }
 0x23f   : > { %v1727_v4 = vadd.f32 %v1726_v40, %v1678_v44  ;;  %v1597_v40 = vadd.f32 %v1596_v52, %v4521_v21 }
 0x241   : > { %v1798_v53 = vmul.f32 0.2, %v1727_v4  ;;  %vm1766_vm3 = vcmp.gt.f32.partialorder %v1727_v4, 0.0 }
 0x243   : > { %v1830_v55 = vsel %vm1766_vm3, %v1727_v4, %v1798_v53 }
 0x244   : > { %v1679_v10 = vpop.f32.mrf.mxu0 }
 0x245   : > { %v1680_v23 = vadd.f32 %v1679_v10, %v1631_v12  ;;  %v1728_v46 = vpop.f32.mrf.mxu1  ;;  %v1646_v12 = vadd.f32 %v1645_v26, %v1597_v40  ;;  %v1604_v43 = vpop.f32.mrf.mxu2 }
 0x246   : > { %v1605_v52 = vadd.f32 %v1604_v43, %v4539_v37 }
 0x247   : > { %v1729_v45 = vadd.f32 %v1728_v46, %v1680_v23 }
 0x249   : > { %vm1768_vm4 = vcmp.gt.f32.partialorder %v1729_v45, 0.0  ;;  %v1800_v58 = vmul.f32 0.2, %v1729_v45 }
 0x24b   : > { %v1832_v8 = vsel %vm1768_vm4, %v1729_v45, %v1800_v58  ;;  %v1650_v45 = vpop.f32.mrf.mxu3  ;;  %v1600_v58 = vadd.f32 %v1599_v54, %v4524_v63 }
 0x24c   : > { %v1682_v19 = vpop.f32.mrf.mxu0  ;;  %v1860_v7 = vpack.c.bf16 %v1832_v8, %v1830_v55 }
 0x24d   : > { %v1731_v30 = vpop.f32.mrf.mxu1  ;;  %v1683_v2 = vadd.f32 %v1682_v19, %v1634_v60  ;;  %v1649_v21 = vadd.f32 %v1648_v16, %v1600_v58  ;;  %v1606_v22 = vpop.f32.mrf.mxu2 }
 0x24e   : > { %2067 = vmatmul.bf16.gmra.mxu3 %v1860_v7 }
 0x24f   : > { %v1732_v31 = vadd.f32 %v1731_v30, %v1683_v2 }
 0x251   : > { %v1802_v57 = vmul.f32 0.2, %v1732_v31  ;;  %vm1770_vm5 = vcmp.gt.f32.partialorder %v1732_v31, 0.0 }
 0x253   : > { %v1834_v48 = vsel %vm1770_vm5, %v1732_v31, %v1802_v57  ;;  %v1651_v31 = vadd.f32 %v1650_v45, %v1602_v5 }
 0x254   : > { %v1684_v62 = vpop.f32.mrf.mxu0 }
 0x255   : > { %v1685_v59 = vadd.f32 %v1684_v62, %v1636_v13  ;;  %v1733_v27 = vpop.f32.mrf.mxu1  ;;  %v1653_v13 = vpop.f32.mrf.mxu3 }
 0x256   : > { %v1609_v17 = vpop.f32.mrf.mxu2 }
 0x257   : > { %v1734_v15 = vadd.f32 %v1733_v27, %v1685_v59  ;;  %v1610_v34 = vadd.f32 %v1609_v17, %v4554_v39 }
 0x259   : > { %vm1772_vm6 = vcmp.gt.f32.partialorder %v1734_v15, 0.0  ;;  %v1804_v51 = vmul.f32 0.2, %v1734_v15 }
 0x25b   : > { %v1836_v33 = vsel %vm1772_vm6, %v1734_v15, %v1804_v51 }
 0x25c   : > { %v1687_v29 = vpop.f32.mrf.mxu0  ;;  %v1862_v18 = vpack.c.bf16 %v1836_v33, %v1834_v48 }
 0x25d   : > { %v1736_v25 = vpop.f32.mrf.mxu1  ;;  %v1688_v47 = vadd.f32 %v1687_v29, %v1639_v50  ;;  %v1655_v29 = vpop.f32.mrf.mxu3  ;;  %v1654_v50 = vadd.f32 %v1653_v13, %v1605_v52 }
 0x25e   : > { %2072 = vmatmul.bf16.gmra.mxu3 %v1862_v18 }
 0x25f   : > { %v1737_v14 = vadd.f32 %v1736_v25, %v1688_v47  ;;  %v1607_v47 = vadd.f32 %v1606_v22, %v4551_v42 }
 0x261   : > { %v1806_v9 = vmul.f32 0.2, %v1737_v14  ;;  %vm1774_vm7 = vcmp.gt.f32.partialorder %v1737_v14, 0.0  ;;  %v1656_v54 = vadd.f32 %v1655_v29, %v1607_v47 }
 0x263   : > { %v1838_v41 = vsel %vm1774_vm7, %v1737_v14, %v1806_v9 }
 0x264   : > { %v1689_v36 = vpop.f32.mrf.mxu0 }
 0x265   : > { %v1690_v20 = vadd.f32 %v1689_v36, %v1641_v1  ;;  %v1738_v24 = vpop.f32.mrf.mxu1  ;;  %v1611_v36 = vpop.f32.mrf.mxu2 }
 0x266   : > { %v1612_v49 = vadd.f32 %v1611_v36, %v4563_v3  ;;  %v4584_v3 = vld [vmem:[%s4686_s4] ss:$0 sm:$0xff] }
 0x267   : > { %v1739_v11 = vadd.f32 %v1738_v24, %v1690_v20  ;;  %v1658_v24 = vpop.f32.mrf.mxu3 }
 0x268   : > { %v1659_v42 = vadd.f32 %v1658_v24, %v1610_v34 }
 0x269   : > { %vm1776_vm8 = vcmp.gt.f32.partialorder %v1739_v11, 0.0  ;;  %v1808_v35 = vmul.f32 0.2, %v1739_v11 }
 0x26b   : > { %v1840_v61 = vsel %vm1776_vm8, %v1739_v11, %v1808_v35 }
 0x26c   : > { %v1692_v0 = vpop.f32.mrf.mxu0  ;;  %v1864_v38 = vpack.c.bf16 %v1840_v61, %v1838_v41 }
 0x26d   : > { %v1741_v28 = vpop.f32.mrf.mxu1  ;;  %v1693_v44 = vadd.f32 %v1692_v0, %v1644_v32 }
 0x26e   : > { %2077 = vmatmul.bf16.gmra.mxu3 %v1864_v38 }
 0x26f   : > { %v1742_v4 = vadd.f32 %v1741_v28, %v1693_v44  ;;  %v2014_v28 = vpop.f32.mrf.mxu2  ;;  %v1660_v40 = vpop.f32.mrf.mxu3 }
 0x270   : > { %v1661_v44 = vadd.f32 %v1660_v40, %v1612_v49 }
 0x271   : > { %v1810_v6 = vmul.f32 0.2, %v1742_v4  ;;  %vm1778_vm9 = vcmp.gt.f32.partialorder %v1742_v4, 0.0 }
 0x273   : > { %v1842_v8 = vsel %vm1778_vm9, %v1742_v4, %v1810_v6 }
 0x274   : > { %v1694_v10 = vpop.f32.mrf.mxu0 }
 0x275   : > { %v1695_v23 = vadd.f32 %v1694_v10, %v1646_v12  ;;  %v1743_v46 = vpop.f32.mrf.mxu1 }
 0x277   : > { %v1744_v53 = vadd.f32 %v1743_v46, %v1695_v23  ;;  %v2016_v43 = vpop.f32.mrf.mxu2 }
 0x278   : > { %v2017_v13 = vadd.f32 %v4584_v3, %v2016_v43 }
 0x279   : > { %vm1780_vm10 = vcmp.gt.f32.partialorder %v1744_v53, 0.0  ;;  %v1812_v55 = vmul.f32 0.2, %v1744_v53 }
 0x27b   : > { %v1844_v19 = vsel %vm1780_vm10, %v1744_v53, %v1812_v55 }
 0x27c   : > { %v1697_v7 = vpop.f32.mrf.mxu0  ;;  %v1866_v60 = vpack.c.bf16 %v1844_v19, %v1842_v8  ;;  %v2015_v19 = vadd.f32 %v4584_v3, %v2014_v28 }
 0x27d   : > { %v1746_v30 = vpop.f32.mrf.mxu1  ;;  %v1698_v2 = vadd.f32 %v1697_v7, %v1649_v21  ;;  %v4590_v21 = vld [vmem:[%s4687_s5] ss:$0 sm:$0xff] }
 0x27e   : > { %2082 = vmatmul.bf16.gmra.mxu3 %v1866_v60 }
 0x27f   : > { %v1747_v62 = vadd.f32 %v1746_v30, %v1698_v2  ;;  %v2019_v55 = vpop.f32.mrf.mxu2 }
 0x281   : > { %v1814_v63 = vmul.f32 0.2, %v1747_v62  ;;  %vm1782_vm11 = vcmp.gt.f32.partialorder %v1747_v62, 0.0 }
 0x283   : > { %v1846_v48 = vsel %vm1782_vm11, %v1747_v62, %v1814_v63  ;;  %v2020_v63 = vadd.f32 %v4584_v3, %v2019_v55 }
 0x284   : > { %v1699_v59 = vpop.f32.mrf.mxu0 }
 0x285   : > { %v1700_v27 = vadd.f32 %v1699_v59, %v1651_v31  ;;  %v1748_v57 = vpop.f32.mrf.mxu1 }
 0x287   : > { %v1749_v15 = vadd.f32 %v1748_v57, %v1700_v27  ;;  %v2021_v8 = vpop.f32.mrf.mxu2 }
 0x288   : > { %v2022_v29 = vadd.f32 %v4584_v3, %v2021_v8 }
 0x289   : > { %vm1784_vm12 = vcmp.gt.f32.partialorder %v1749_v15, 0.0  ;;  %v1816_v51 = vmul.f32 0.2, %v1749_v15 }
 0x28b   : > { %v1848_v33 = vsel %vm1784_vm12, %v1749_v15, %v1816_v51 }
 0x28c   : > { %v1702_v56 = vpop.f32.mrf.mxu0  ;;  %v1868_v18 = vpack.c.bf16 %v1848_v33, %v1846_v48 }
 0x28d   : > { %v1751_v25 = vpop.f32.mrf.mxu1  ;;  %v1703_v1 = vadd.f32 %v1702_v56, %v1654_v50 }
 0x28e   : > { %2087 = vmatmul.bf16.gmra.mxu3 %v1868_v18 }
 0x28f   : > { %v1752_v14 = vadd.f32 %v1751_v25, %v1703_v1  ;;  %v2024_v2 = vpop.f32.mrf.mxu2 }
 0x291   : > { %v1818_v9 = vmul.f32 0.2, %v1752_v14  ;;  %vm1786_vm13 = vcmp.gt.f32.partialorder %v1752_v14, 0.0 }
 0x293   : > { %v1850_v41 = vsel %vm1786_vm13, %v1752_v14, %v1818_v9 }
 0x294   : > { %v1704_v26 = vpop.f32.mrf.mxu0 }
 0x295   : > { %v1705_v20 = vadd.f32 %v1704_v26, %v1656_v54  ;;  %v1753_v37 = vpop.f32.mrf.mxu1  ;;  %v2025_v54 = vadd.f32 %v4584_v3, %v2024_v2 }
 0x297   : > { %v1754_v11 = vadd.f32 %v1753_v37, %v1705_v20  ;;  %v2026_v15 = vpop.f32.mrf.mxu2 }
 0x298   : > { %v2027_v9 = vadd.f32 %v4584_v3, %v2026_v15 }
 0x299   : > { %vm1788_vm14 = vcmp.gt.f32.partialorder %v1754_v11, 0.0  ;;  %v1820_v35 = vmul.f32 0.2, %v1754_v11 }
 0x29b   : > { %v1852_v61 = vsel %vm1788_vm14, %v1754_v11, %v1820_v35 }
 0x29c   : > { %v1707_v0 = vpop.f32.mrf.mxu0  ;;  %v1870_v38 = vpack.c.bf16 %v1852_v61, %v1850_v41 }
 0x29d   : > { %v1756_v32 = vpop.f32.mrf.mxu1  ;;  %v1708_v16 = vadd.f32 %v1707_v0, %v1659_v42 }
 0x29e   : > { %2092 = vmatmul.bf16.gmra.mxu3 %v1870_v38 }
 0x29f   : > { %v1757_v12 = vadd.f32 %v1756_v32, %v1708_v16  ;;  %v2029_v50 = vpop.f32.mrf.mxu2 }
 0x2a0   : > { %v2030_v38 = vadd.f32 %v4584_v3, %v2029_v50 }
 0x2a1   : > { %v1822_v39 = vmul.f32 0.2, %v1757_v12  ;;  %vm1790_vm15 = vcmp.gt.f32.partialorder %v1757_v12, 0.0 }
 0x2a3   : > { %v1854_v53 = vsel %vm1790_vm15, %v1757_v12, %v1822_v39 }
 0x2a4   : > { %v1709_v4 = vpop.f32.mrf.mxu0 }
 0x2a5   : > { %v1710_v10 = vadd.f32 %v1709_v4, %v1661_v44  ;;  %v1758_v23 = vpop.f32.mrf.mxu1 }
 0x2a7   : > { %v1759_v46 = vadd.f32 %v1758_v23, %v1710_v10  ;;  %v2031_v20 = vpop.f32.mrf.mxu2 }
 0x2a8   : > { %v2032_v40 = vadd.f32 %v4584_v3, %v2031_v20 }
 0x2a9   : > { %vm1792_vm1 = vcmp.gt.f32.partialorder %v1759_v46, 0.0  ;;  %v1824_v6 = vmul.f32 0.2, %v1759_v46 }
 0x2ab   : > { %v1856_v45 = vsel %vm1792_vm1, %v1759_v46, %v1824_v6 }
 0x2ac   : > { %v1872_v58 = vpack.c.bf16 %v1856_v45, %v1854_v53 }
 0x2ae   : > { %2097 = vmatmul.bf16.gmra.mxu3 %v1872_v58 }
 0x2af   : > { %v2034_v61 = vpop.f32.mrf.mxu2 }
 0x2b0   : > { %v2035_v46 = vadd.f32 %v4584_v3, %v2034_v61 }
 0x2b7   : > { %v2036_v44 = vpop.f32.mrf.mxu2 }
 0x2b8   : > { %v2037_v8 = vadd.f32 %v4584_v3, %v2036_v44 }
 0x2bf   : > { %v2039_v53 = vpop.f32.mrf.mxu2 }
 0x2c1   : > { %v2063_v7 = vpop.f32.mrf.mxu3 }
 0x2c2   : > { %v2064_v60 = vadd.f32 %v2063_v7, %v2015_v19 }
 0x2c4   : > { %v2119_v30 = vmul.f32 0.2, %v2064_v60  ;;  %vm2103_vm0 = vcmp.gt.f32.partialorder %v2064_v60, 0.0 }
 0x2c6   : > { %v2135_v5 = vsel %vm2103_vm0, %v2064_v60, %v2119_v30 }
 0x2c7   : > { %v2155_v22 = vmul.f32 %v4590_v21, %v2135_v5  ;;  %v2041_v30 = vpop.f32.mrf.mxu2 }
 0x2c9   : > { %v2065_v31 = vpop.f32.mrf.mxu3  ;;  %2171 = vadd.xlane.f32.xlu0 %v2155_v22  ;;  %v2040_v22 = vadd.f32 %v4584_v3, %v2039_v53 }
 0x2ca   : > { %v2066_v62 = vadd.f32 %v2065_v31, %v2017_v13 }
 0x2cc   : > { %v2120_v59 = vmul.f32 0.2, %v2066_v62  ;;  %vm2104_vm2 = vcmp.gt.f32.partialorder %v2066_v62, 0.0 }
 0x2ce   : > { %v2136_v27 = vsel %vm2104_vm2, %v2066_v62, %v2120_v59 }
 0x2cf   : > { %v2156_v57 = vmul.f32 %v4590_v21, %v2136_v27  ;;  %v2044_v27 = vpop.f32.mrf.mxu2 }
 0x2d1   : > { %v2068_v52 = vpop.f32.mrf.mxu3  ;;  %2173 = vadd.xlane.f32.xlu0 %v2156_v57 }
 0x2d2   : > { %v2069_v51 = vadd.f32 %v2068_v52, %v2020_v63  ;;  %v2042_v63 = vadd.f32 %v4584_v3, %v2041_v30 }
 0x2d4   : > { %v2121_v17 = vmul.f32 0.2, %v2069_v51  ;;  %vm2105_vm3 = vcmp.gt.f32.partialorder %v2069_v51, 0.0 }
 0x2d6   : > { %v2137_v48 = vsel %vm2105_vm3, %v2069_v51, %v2121_v17  ;;  %vm2527_vm3 = vcmask 7168  }
 0x2d7   : > { %v2157_v33 = vmul.f32 %v4590_v21, %v2137_v48 }
 0x2d9   : > { %v2070_v56 = vpop.f32.mrf.mxu3  ;;  %2175 = vadd.xlane.f32.xlu1 %v2157_v33  ;;  %v2045_v33 = vadd.f32 %v4584_v3, %v2044_v27 }
 0x2da   : > { %v2071_v18 = vadd.f32 %v2070_v56, %v2022_v29  ;;  %v2046_v29 = vpop.f32.mrf.mxu2 }
 0x2dc   : > { %v2122_v25 = vmul.f32 0.2, %v2071_v18  ;;  %vm2106_vm4 = vcmp.gt.f32.partialorder %v2071_v18, 0.0 }
 0x2de   : > { %v2138_v47 = vsel %vm2106_vm4, %v2071_v18, %v2122_v25 }
 0x2df   : > { %v2158_v1 = vmul.f32 %v4590_v21, %v2138_v47 }
 0x2e1   : > { %v2073_v14 = vpop.f32.mrf.mxu3  ;;  %2177 = vadd.xlane.f32.xlu1 %v2158_v1  ;;  %v2047_v1 = vadd.f32 %v4584_v3, %v2046_v29 }
 0x2e2   : > { %v2074_v26 = vadd.f32 %v2073_v14, %v2025_v54 }
 0x2e4   : > { %v2123_v36 = vmul.f32 0.2, %v2074_v26  ;;  %vm2107_vm5 = vcmp.gt.f32.partialorder %v2074_v26, 0.0 }
 0x2e6   : > { %v2139_v37 = vsel %vm2107_vm5, %v2074_v26, %v2123_v36  ;;  %v2049_v26 = vpop.f32.mrf.mxu2 }
 0x2e7   : > { %v2159_v24 = vmul.f32 %v4590_v21, %v2139_v37 }
 0x2e9   : > { %v2075_v11 = vpop.f32.mrf.mxu3  ;;  %2179 = vadd.xlane.f32.xlu2 %v2159_v24  ;;  %v2050_v24 = vadd.f32 %v4584_v3, %v2049_v26 }
 0x2ea   : > { %v2076_v34 = vadd.f32 %v2075_v11, %v2027_v9 }
 0x2ec   : > { %v2124_v35 = vmul.f32 0.2, %v2076_v34  ;;  %vm2108_vm6 = vcmp.gt.f32.partialorder %v2076_v34, 0.0 }
 0x2ee   : > { %v2140_v41 = vsel %vm2108_vm6, %v2076_v34, %v2124_v35  ;;  %v2051_v35 = vpop.f32.mrf.mxu2 }
 0x2ef   : > { %v2160_v0 = vmul.f32 %v4590_v21, %v2140_v41 }
 0x2f1   : > { %v2078_v42 = vpop.f32.mrf.mxu3  ;;  %2181 = vadd.xlane.f32.xlu2 %v2160_v0  ;;  %v2052_v0 = vadd.f32 %v4584_v3, %v2051_v35 }
 0x2f2   : > { %v2079_v32 = vadd.f32 %v2078_v42, %v2030_v38  ;;  %v4622_v42 = vld [vmem:[#allocation2] ss:$0 sm:$0xff] }
 0x2f4   : > { %v2125_v49 = vmul.f32 0.2, %v2079_v32  ;;  %vm2109_vm7 = vcmp.gt.f32.partialorder %v2079_v32, 0.0 }
 0x2f6   : > { %v2141_v28 = vsel %vm2109_vm7, %v2079_v32, %v2125_v49 }
 0x2f7   : > { %v2161_v16 = vmul.f32 %v4590_v21, %v2141_v28 }
 0x2f9   : > { %v2080_v12 = vpop.f32.mrf.mxu3  ;;  %2183 = vadd.xlane.f32.xlu0 %v2161_v16 }
 0x2fa   : > { %v2081_v4 = vadd.f32 %v2080_v12, %v2032_v40 }
 0x2fc   : > { %v2126_v10 = vmul.f32 0.2, %v2081_v4  ;;  %vm2110_vm8 = vcmp.gt.f32.partialorder %v2081_v4, 0.0 }
 0x2fe   : > { %v2142_v23 = vsel %vm2110_vm8, %v2081_v4, %v2126_v10 }
 0x2ff   : > { %v2162_v39 = vmul.f32 %v4590_v21, %v2142_v23 }
 0x301   : > { %v2083_v43 = vpop.f32.mrf.mxu3  ;;  %2185 = vadd.xlane.f32.xlu1 %v2162_v39 }
 0x302   : > { %v2084_v6 = vadd.f32 %v2083_v43, %v2035_v46 }
 0x304   : > { %v2127_v45 = vmul.f32 0.2, %v2084_v6  ;;  %vm2111_vm9 = vcmp.gt.f32.partialorder %v2084_v6, 0.0 }
 0x306   : > { %v2143_v58 = vsel %vm2111_vm9, %v2084_v6, %v2127_v45 }
 0x307   : > { %v2163_v55 = vmul.f32 %v4590_v21, %v2143_v58 }
 0x309   : > { %v2085_v19 = vpop.f32.mrf.mxu3  ;;  %2187 = vadd.xlane.f32.xlu2 %v2163_v55 }
 0x30a   : > { %v2086_v7 = vadd.f32 %v2085_v19, %v2037_v8 }
 0x30c   : > { %v2128_v60 = vmul.f32 0.2, %v2086_v7  ;;  %vm2112_vm10 = vcmp.gt.f32.partialorder %v2086_v7, 0.0 }
 0x30e   : > { %v2144_v5 = vsel %vm2112_vm10, %v2086_v7, %v2128_v60 }
 0x30f   : > { %v2164_v2 = vmul.f32 %v4590_v21, %v2144_v5 }
 0x311   : > { %v2088_v13 = vpop.f32.mrf.mxu3  ;;  %2189 = vadd.xlane.f32.xlu0 %v2164_v2 }
 0x312   : > { %v2089_v31 = vadd.f32 %v2088_v13, %v2040_v22 }
 0x314   : > { %v2129_v62 = vmul.f32 0.2, %v2089_v31  ;;  %vm2113_vm11 = vcmp.gt.f32.partialorder %v2089_v31, 0.0 }
 0x316   : > { %v2145_v59 = vsel %vm2113_vm11, %v2089_v31, %v2129_v62 }
 0x317   : > { %v2165_v57 = vmul.f32 %v4590_v21, %v2145_v59 }
 0x319   : > { %v2090_v15 = vpop.f32.mrf.mxu3  ;;  %2191 = vadd.xlane.f32.xlu1 %v2165_v57 }
 0x31a   : > { %v2091_v52 = vadd.f32 %v2090_v15, %v2042_v63 }
 0x31c   : > { %v2130_v51 = vmul.f32 0.2, %v2091_v52  ;;  %vm2114_vm12 = vcmp.gt.f32.partialorder %v2091_v52, 0.0 }
 0x31e   : > { %v2146_v17 = vsel %vm2114_vm12, %v2091_v52, %v2130_v51 }
 0x31f   : > { %v2166_v48 = vmul.f32 %v4590_v21, %v2146_v17 }
 0x321   : > { %v2093_v56 = vpop.f32.mrf.mxu3  ;;  %2193 = vadd.xlane.f32.xlu2 %v2166_v48 }
 0x322   : > { %v2094_v18 = vadd.f32 %v2093_v56, %v2045_v33 }
 0x324   : > { %v2131_v50 = vmul.f32 0.2, %v2094_v18  ;;  %vm2115_vm13 = vcmp.gt.f32.partialorder %v2094_v18, 0.0 }
 0x326   : > { %v2147_v25 = vsel %vm2115_vm13, %v2094_v18, %v2131_v50 }
 0x327   : > { %v2167_v47 = vmul.f32 %v4590_v21, %v2147_v25 }
 0x329   : > { %v2095_v54 = vpop.f32.mrf.mxu3  ;;  %2195 = vadd.xlane.f32.xlu0 %v2167_v47 }
 0x32a   : > { %v2096_v14 = vadd.f32 %v2095_v54, %v2047_v1 }
 0x32c   : > { %v2132_v36 = vmul.f32 0.2, %v2096_v14  ;;  %vm2116_vm14 = vcmp.gt.f32.partialorder %v2096_v14, 0.0 }
 0x32e   : > { %v2148_v20 = vsel %vm2116_vm14, %v2096_v14, %v2132_v36 }
 0x32f   : > { %v2168_v37 = vmul.f32 %v4590_v21, %v2148_v20 }
 0x331   : > { %v2098_v9 = vpop.f32.mrf.mxu3  ;;  %2197 = vadd.xlane.f32.xlu1 %v2168_v37 }
 0x332   : > { %v2099_v11 = vadd.f32 %v2098_v9, %v2050_v24 }
 0x334   : > { %v2133_v34 = vmul.f32 0.2, %v2099_v11  ;;  %vm2117_vm15 = vcmp.gt.f32.partialorder %v2099_v11, 0.0 }
 0x336   : > { %v2149_v41 = vsel %vm2117_vm15, %v2099_v11, %v2133_v34 }
 0x337   : > { %v2169_v61 = vmul.f32 %v4590_v21, %v2149_v41 }
 0x339   : > { %v2100_v38 = vpop.f32.mrf.mxu3  ;;  %2199 = vadd.xlane.f32.xlu2 %v2169_v61 }
 0x33a   : > { %v2101_v32 = vadd.f32 %v2100_v38, %v2052_v0 }
 0x33c   : > { %v2134_v49 = vmul.f32 0.2, %v2101_v32  ;;  %v2172_v28 = vpop.xlane.xlu0 %2171  ;;  %vm2118_vm1 = vcmp.gt.f32.partialorder %v2101_v32, 0.0 }
 0x33d   : > { %v2207_v16 = vadd.f32 %v4622_v42, %v2172_v28 }
 0x33e   : > { %v2150_v40 = vsel %vm2118_vm1, %v2101_v32, %v2134_v49 }
 0x33f   : > { %v3081_v44 = vmul.f32 -1.442695, %v2207_v16  ;;  %v2170_v12 = vmul.f32 %v4590_v21, %v2150_v40 }
 0x341   : > { %3225 = vpow2.f32 %v3081_v44  ;;  %2201 = vadd.xlane.f32.xlu0 %v2170_v12 }
 0x344   : > { %v2174_v4 = vpop.xlane.xlu0 %2173 }
 0x345   : > { %v2208_v10 = vadd.f32 %v4622_v42, %v2174_v4 }
 0x347   : > { %v3226_v3 = vpop.eup %3225  ;;  %v3082_v23 = vmul.f32 -1.442695, %v2208_v10 }
 0x348   : > { %v2271_v39 = vadd.f32 1.0, %v3226_v3 }
 0x349   : > { %3227 = vpow2.f32 %v3082_v23 }
 0x34a   : > { %3229 = vrcp.f32 %v2271_v39  ;;  %v2298_v8 = vand.u32 2147483648, %v2271_v39  ;;  %v2296_v60 = vand.u32 2147483647, %v2271_v39  ;;  %vm2292_vm2 = vweird.f32 %v2271_v39 }
 0x34c   : > { %v2176_v46 = vpop.xlane.xlu1 %2175  ;;  %v2299_v31 = vor.u32 1.1754944e-38, %v2298_v8  ;;  %vm2297_vm5 = vcmp.eq.f32.partialorder %v2296_v60, 8.507059e+37 }
 0x34d   : > { %v2209_v43 = vadd.f32 %v4622_v42, %v2176_v46 }
 0x34f   : > { %v3228_v6 = vpop.eup %3227  ;;  %v3083_v53 = vmul.f32 -1.442695, %v2209_v43 }
 0x350   : > { %v3230_v45 = vpop.eup %3229  ;;  %v2272_v58 = vadd.f32 1.0, %v3228_v6 }
 0x351   : > { %v2288_v55 = vmul.f32 %v3230_v45, %v2271_v39  ;;  %3231 = vpow2.f32 %v3083_v53  ;;  %vm2293_vm0 = vweird.f32 %v3230_v45 }
 0x352   : > { %3233 = vrcp.f32 %v2272_v58  ;;  %vm2294_vm4 = vmor %vm2292_vm2, %vm2293_vm0  ;;  %v2313_v15 = vand.u32 2147483648, %v2272_v58  ;;  %v2311_v17 = vand.u32 2147483647, %v2272_v58  ;;  %vm2307_vm7 = vweird.f32 %v2272_v58 }
 0x353   : > { %v2289_v21 = vsub.f32 1.0, %v2288_v55 }
 0x354   : > { %v2178_v19 = vpop.xlane.xlu1 %2177  ;;  %v2314_v50 = vor.u32 1.1754944e-38, %v2313_v15  ;;  %vm2312_vm9 = vcmp.eq.f32.partialorder %v2311_v17, 8.507059e+37 }
 0x355   : > { %v2290_v7 = vmul.f32 %v3230_v45, %v2289_v21  ;;  %v2210_v30 = vadd.f32 %v4622_v42, %v2178_v19 }
 0x357   : > { %v3232_v5 = vpop.eup %3231  ;;  %v2291_v2 = vadd.f32 %v3230_v45, %v2290_v7  ;;  %v3084_v22 = vmul.f32 -1.442695, %v2210_v30 }
 0x358   : > { %v3234_v13 = vpop.eup %3233  ;;  %v2273_v62 = vadd.f32 1.0, %v3232_v5 }
 0x359   : > { %v2295_v59 = vsel %vm2294_vm4, %v3230_v45, %v2291_v2  ;;  %v2303_v27 = vmul.f32 %v3234_v13, %v2272_v58  ;;  %3235 = vpow2.f32 %v3084_v22  ;;  %vm2308_vm6 = vweird.f32 %v3234_v13 }
 0x35a   : > { %v2300_v57 = vsel %vm2297_vm5, %v2299_v31, %v2295_v59  ;;  %3237 = vrcp.f32 %v2273_v62  ;;  %vm2309_vm8 = vmor %vm2307_vm7, %vm2308_vm6  ;;  %v2328_v26 = vand.u32 2147483648, %v2273_v62  ;;  %v2326_v37 = vand.u32 2147483647, %v2273_v62 }
 0x35b   : > { %2528 = vst.msk [vmem:[%s4633_s14] sm:$0xff] %vm2527_vm3, %v2300_v57  ;;  %v2304_v63 = vsub.f32 1.0, %v2303_v27  ;;  %vm2322_vm11 = vweird.f32 %v2273_v62 }
 0x35c   : > { %v2180_v52 = vpop.xlane.xlu2 %2179  ;;  %v2329_v41 = vor.u32 1.1754944e-38, %v2328_v26  ;;  %vm2327_vm13 = vcmp.eq.f32.partialorder %v2326_v37, 8.507059e+37 }
 0x35d   : > { %v2305_v51 = vmul.f32 %v3234_v13, %v2304_v63  ;;  %v2211_v48 = vadd.f32 %v4622_v42, %v2180_v52 }
 0x35f   : > { %v3236_v33 = vpop.eup %3235  ;;  %v2306_v29 = vadd.f32 %v3234_v13, %v2305_v51  ;;  %v3085_v56 = vmul.f32 -1.442695, %v2211_v48 }
 0x360   : > { %v3238_v18 = vpop.eup %3237  ;;  %v2274_v25 = vadd.f32 1.0, %v3236_v33 }
 0x361   : > { %v2310_v47 = vsel %vm2309_vm8, %v3234_v13, %v2306_v29  ;;  %v2318_v1 = vmul.f32 %v3238_v18, %v2273_v62  ;;  %3239 = vpow2.f32 %v3085_v56  ;;  %vm2323_vm10 = vweird.f32 %v3238_v18 }
 0x362   : > { %v2315_v54 = vsel %vm2312_vm9, %v2314_v50, %v2310_v47  ;;  %3241 = vrcp.f32 %v2274_v25  ;;  %vm2324_vm12 = vmor %vm2322_vm11, %vm2323_vm10  ;;  %v2343_v28 = vand.u32 2147483648, %v2274_v25  ;;  %v2341_v44 = vand.u32 2147483647, %v2274_v25 }
 0x363   : > { %2529 = vst.msk [vmem:[%s4633_s14 + $0x8] sm:$0xff] %vm2527_vm3, %v2315_v54  ;;  %v2319_v14 = vsub.f32 1.0, %v2318_v1  ;;  %vm2337_vm15 = vweird.f32 %v2274_v25 }
 0x364   : > { %v2182_v36 = vpop.xlane.xlu2 %2181  ;;  %v2344_v39 = vor.u32 1.1754944e-38, %v2343_v28  ;;  %vm2342_vm0 = vcmp.eq.f32.partialorder %v2341_v44, 8.507059e+37 }
 0x365   : > { %v2320_v20 = vmul.f32 %v3238_v18, %v2319_v14  ;;  %v2212_v24 = vadd.f32 %v4622_v42, %v2182_v36 }
 0x367   : > { %v3240_v9 = vpop.eup %3239  ;;  %v2321_v11 = vadd.f32 %v3238_v18, %v2320_v20  ;;  %v3086_v34 = vmul.f32 -1.442695, %v2212_v24 }
 0x368   : > { %v3242_v35 = vpop.eup %3241  ;;  %v2275_v61 = vadd.f32 1.0, %v3240_v9 }
 0x369   : > { %v2325_v0 = vsel %vm2324_vm12, %v3238_v18, %v2321_v11  ;;  %v2333_v38 = vmul.f32 %v3242_v35, %v2274_v25  ;;  %3243 = vpow2.f32 %v3086_v34  ;;  %vm2338_vm14 = vweird.f32 %v3242_v35 }
 0x36a   : > { %v2330_v32 = vsel %vm2327_vm13, %v2329_v41, %v2325_v0  ;;  %3245 = vrcp.f32 %v2275_v61  ;;  %vm2339_vm1 = vmor %vm2337_vm15, %vm2338_vm14  ;;  %v2358_v58 = vand.u32 2147483648, %v2275_v61  ;;  %v2356_v8 = vand.u32 2147483647, %v2275_v61 }
 0x36b   : > { %2530 = vst.msk [vmem:[%s4633_s14 + $0x10] sm:$0xff] %vm2527_vm3, %v2330_v32  ;;  %v2334_v49 = vsub.f32 1.0, %v2333_v38  ;;  %vm2352_vm4 = vweird.f32 %v2275_v61 }
 0x36c   : > { %v2184_v16 = vpop.xlane.xlu0 %2183  ;;  %v2359_v2 = vor.u32 1.1754944e-38, %v2358_v58  ;;  %vm2357_vm6 = vcmp.eq.f32.partialorder %v2356_v8, 8.507059e+37 }
 0x36d   : > { %v2335_v40 = vmul.f32 %v3242_v35, %v2334_v49  ;;  %v2213_v12 = vadd.f32 %v4622_v42, %v2184_v16 }
 0x36f   : > { %v3244_v4 = vpop.eup %3243  ;;  %v2336_v10 = vadd.f32 %v3242_v35, %v2335_v40  ;;  %v3087_v3 = vmul.f32 -1.442695, %v2213_v12 }
 0x370   : > { %v3246_v23 = vpop.eup %3245  ;;  %v2276_v46 = vadd.f32 1.0, %v3244_v4 }
 0x371   : > { %v2340_v43 = vsel %vm2339_vm1, %v3242_v35, %v2336_v10  ;;  %v2348_v6 = vmul.f32 %v3246_v23, %v2275_v61  ;;  %3247 = vpow2.f32 %v3087_v3  ;;  %vm2353_vm2 = vweird.f32 %v3246_v23 }
 0x372   : > { %v2345_v53 = vsel %vm2342_vm0, %v2344_v39, %v2340_v43  ;;  %3249 = vrcp.f32 %v2276_v46  ;;  %vm2354_vm5 = vmor %vm2352_vm4, %vm2353_vm2  ;;  %v2373_v27 = vand.u32 2147483648, %v2276_v46  ;;  %v2371_v15 = vand.u32 2147483647, %v2276_v46 }
 0x373   : > { %2531 = vst.msk [vmem:[%s4633_s14 + $0x18] sm:$0xff] %vm2527_vm3, %v2345_v53  ;;  %v2349_v45 = vsub.f32 1.0, %v2348_v6  ;;  %vm2367_vm8 = vweird.f32 %v2276_v46 }
 0x374   : > { %v2186_v55 = vpop.xlane.xlu1 %2185  ;;  %v2374_v29 = vor.u32 1.1754944e-38, %v2373_v27  ;;  %vm2372_vm10 = vcmp.eq.f32.partialorder %v2371_v15, 8.507059e+37 }
 0x375   : > { %v2350_v21 = vmul.f32 %v3246_v23, %v2349_v45  ;;  %v2214_v19 = vadd.f32 %v4622_v42, %v2186_v55 }
 0x377   : > { %v3248_v7 = vpop.eup %3247  ;;  %v2351_v60 = vadd.f32 %v3246_v23, %v2350_v21  ;;  %v3088_v30 = vmul.f32 -1.442695, %v2214_v19 }
 0x378   : > { %v3250_v5 = vpop.eup %3249  ;;  %v2277_v22 = vadd.f32 1.0, %v3248_v7 }
 0x379   : > { %v2355_v13 = vsel %vm2354_vm5, %v3246_v23, %v2351_v60  ;;  %v2363_v31 = vmul.f32 %v3250_v5, %v2276_v46  ;;  %3251 = vpow2.f32 %v3088_v30  ;;  %vm2368_vm7 = vweird.f32 %v3250_v5 }
 0x37a   : > { %v2360_v62 = vsel %vm2357_vm6, %v2359_v2, %v2355_v13  ;;  %3253 = vrcp.f32 %v2277_v22  ;;  %vm2369_vm9 = vmor %vm2367_vm8, %vm2368_vm7  ;;  %v2388_v1 = vand.u32 2147483648, %v2277_v22  ;;  %v2386_v26 = vand.u32 2147483647, %v2277_v22 }
 0x37b   : > { %2532 = vst.msk [vmem:[%s4633_s14 + $0x20] sm:$0xff] %vm2527_vm3, %v2360_v62  ;;  %v2364_v59 = vsub.f32 1.0, %v2363_v31  ;;  %vm2382_vm12 = vweird.f32 %v2277_v22 }
 0x37c   : > { %v2188_v57 = vpop.xlane.xlu2 %2187  ;;  %v2389_v11 = vor.u32 1.1754944e-38, %v2388_v1  ;;  %vm2387_vm14 = vcmp.eq.f32.partialorder %v2386_v26, 8.507059e+37 }
 0x37d   : > { %v2365_v63 = vmul.f32 %v3250_v5, %v2364_v59  ;;  %v2215_v52 = vadd.f32 %v4622_v42, %v2188_v57 }
 0x37f   : > { %v3252_v51 = vpop.eup %3251  ;;  %v2366_v17 = vadd.f32 %v3250_v5, %v2365_v63  ;;  %v3089_v48 = vmul.f32 -1.442695, %v2215_v52 }
 0x380   : > { %v3254_v33 = vpop.eup %3253  ;;  %v2278_v56 = vadd.f32 1.0, %v3252_v51 }
 0x381   : > { %v2370_v18 = vsel %vm2369_vm9, %v3250_v5, %v2366_v17  ;;  %v2378_v50 = vmul.f32 %v3254_v33, %v2277_v22  ;;  %3255 = vpow2.f32 %v3089_v48  ;;  %vm2383_vm11 = vweird.f32 %v3254_v33 }
 0x382   : > { %v2375_v25 = vsel %vm2372_vm10, %v2374_v29, %v2370_v18  ;;  %3257 = vrcp.f32 %v2278_v56  ;;  %vm2384_vm13 = vmor %vm2382_vm12, %vm2383_vm11  ;;  %v2403_v38 = vand.u32 2147483648, %v2278_v56  ;;  %v2401_v28 = vand.u32 2147483647, %v2278_v56 }
 0x383   : > { %2533 = vst.msk [vmem:[%s4633_s14 + $0x28] sm:$0xff] %vm2527_vm3, %v2375_v25  ;;  %v2379_v47 = vsub.f32 1.0, %v2378_v50  ;;  %vm2397_vm1 = vweird.f32 %v2278_v56 }
 0x384   : > { %v2190_v54 = vpop.xlane.xlu0 %2189  ;;  %v2404_v10 = vor.u32 1.1754944e-38, %v2403_v38  ;;  %vm2402_vm2 = vcmp.eq.f32.partialorder %v2401_v28, 8.507059e+37 }
 0x385   : > { %v2380_v14 = vmul.f32 %v3254_v33, %v2379_v47  ;;  %v2216_v36 = vadd.f32 %v4622_v42, %v2190_v54 }
 0x387   : > { %v3256_v20 = vpop.eup %3255  ;;  %v2381_v37 = vadd.f32 %v3254_v33, %v2380_v14  ;;  %v3090_v24 = vmul.f32 -1.442695, %v2216_v36 }
 0x388   : > { %v3258_v9 = vpop.eup %3257  ;;  %v2279_v34 = vadd.f32 1.0, %v3256_v20 }
 0x389   : > { %v2385_v35 = vsel %vm2384_vm13, %v3254_v33, %v2381_v37  ;;  %v2393_v41 = vmul.f32 %v3258_v9, %v2278_v56  ;;  %3259 = vpow2.f32 %v3090_v24  ;;  %vm2398_vm15 = vweird.f32 %v3258_v9 }
 0x38a   : > { %v2390_v61 = vsel %vm2387_vm14, %v2389_v11, %v2385_v35  ;;  %3261 = vrcp.f32 %v2279_v34  ;;  %vm2399_vm0 = vmor %vm2397_vm1, %vm2398_vm15  ;;  %v2418_v6 = vand.u32 2147483648, %v2279_v34  ;;  %v2416_v58 = vand.u32 2147483647, %v2279_v34 }
 0x38b   : > { %2534 = vst.msk [vmem:[%s4633_s14 + $0x30] sm:$0xff] %vm2527_vm3, %v2390_v61  ;;  %v2394_v0 = vsub.f32 1.0, %v2393_v41  ;;  %vm2412_vm5 = vweird.f32 %v2279_v34 }
 0x38c   : > { %v2192_v32 = vpop.xlane.xlu1 %2191  ;;  %v2419_v60 = vor.u32 1.1754944e-38, %v2418_v6  ;;  %vm2417_vm7 = vcmp.eq.f32.partialorder %v2416_v58, 8.507059e+37 }
 0x38d   : > { %v2395_v49 = vmul.f32 %v3258_v9, %v2394_v0  ;;  %v2217_v16 = vadd.f32 %v4622_v42, %v2192_v32 }
 0x38f   : > { %v3260_v40 = vpop.eup %3259  ;;  %v2396_v44 = vadd.f32 %v3258_v9, %v2395_v49  ;;  %v3091_v12 = vmul.f32 -1.442695, %v2217_v16 }
 0x390   : > { %v3262_v4 = vpop.eup %3261  ;;  %v2280_v3 = vadd.f32 1.0, %v3260_v40 }
 0x391   : > { %v2400_v23 = vsel %vm2399_vm0, %v3258_v9, %v2396_v44  ;;  %v2408_v39 = vmul.f32 %v3262_v4, %v2279_v34  ;;  %3263 = vpow2.f32 %v3091_v12  ;;  %vm2413_vm4 = vweird.f32 %v3262_v4 }
 0x392   : > { %v2405_v46 = vsel %vm2402_vm2, %v2404_v10, %v2400_v23  ;;  %3265 = vrcp.f32 %v2280_v3  ;;  %vm2414_vm6 = vmor %vm2412_vm5, %vm2413_vm4  ;;  %v2433_v31 = vand.u32 2147483648, %v2280_v3  ;;  %v2431_v27 = vand.u32 2147483647, %v2280_v3 }
 0x393   : > { %2535 = vst.msk [vmem:[%s4633_s14 + $0x38] sm:$0xff] %vm2527_vm3, %v2405_v46  ;;  %v2409_v43 = vsub.f32 1.0, %v2408_v39  ;;  %vm2427_vm9 = vweird.f32 %v2280_v3 }
 0x394   : > { %v2194_v53 = vpop.xlane.xlu2 %2193  ;;  %v2434_v17 = vor.u32 1.1754944e-38, %v2433_v31  ;;  %vm2432_vm11 = vcmp.eq.f32.partialorder %v2431_v27, 8.507059e+37 }
 0x395   : > { %v2410_v45 = vmul.f32 %v3262_v4, %v2409_v43  ;;  %v2218_v55 = vadd.f32 %v4622_v42, %v2194_v53 }
 0x397   : > { %v3264_v21 = vpop.eup %3263  ;;  %v2411_v8 = vadd.f32 %v3262_v4, %v2410_v45  ;;  %v3092_v19 = vmul.f32 -1.442695, %v2218_v55 }
 0x398   : > { %v3266_v7 = vpop.eup %3265  ;;  %v2281_v30 = vadd.f32 1.0, %v3264_v21 }
 0x399   : > { %v2415_v5 = vsel %vm2414_vm6, %v3262_v4, %v2411_v8  ;;  %v2423_v2 = vmul.f32 %v3266_v7, %v2280_v3  ;;  %3267 = vpow2.f32 %v3092_v19  ;;  %vm2428_vm8 = vweird.f32 %v3266_v7 }
 0x39a   : > { %v2420_v22 = vsel %vm2417_vm7, %v2419_v60, %v2415_v5  ;;  %3269 = vrcp.f32 %v2281_v30  ;;  %vm2429_vm10 = vmor %vm2427_vm9, %vm2428_vm8  ;;  %v2448_v50 = vand.u32 2147483648, %v2281_v30  ;;  %v2446_v1 = vand.u32 2147483647, %v2281_v30 }
 0x39b   : > { %2536 = vst.msk [vmem:[%s4633_s14 + $0x40] sm:$0xff] %vm2527_vm3, %v2420_v22  ;;  %v2424_v13 = vsub.f32 1.0, %v2423_v2  ;;  %vm2442_vm13 = vweird.f32 %v2281_v30 }
 0x39c   : > { %v2196_v62 = vpop.xlane.xlu0 %2195  ;;  %v2449_v37 = vor.u32 1.1754944e-38, %v2448_v50  ;;  %vm2447_vm15 = vcmp.eq.f32.partialorder %v2446_v1, 8.507059e+37 }
 0x39d   : > { %v2425_v59 = vmul.f32 %v3266_v7, %v2424_v13  ;;  %v2219_v57 = vadd.f32 %v4622_v42, %v2196_v62 }
 0x39f   : > { %v3268_v63 = vpop.eup %3267  ;;  %v2426_v15 = vadd.f32 %v3266_v7, %v2425_v59  ;;  %v3093_v52 = vmul.f32 -1.442695, %v2219_v57 }
 0x3a0   : > { %v3270_v51 = vpop.eup %3269  ;;  %v2282_v48 = vadd.f32 1.0, %v3268_v63 }
 0x3a1   : > { %v2430_v33 = vsel %vm2429_vm10, %v3266_v7, %v2426_v15  ;;  %v2438_v29 = vmul.f32 %v3270_v51, %v2281_v30  ;;  %3271 = vpow2.f32 %v3093_v52  ;;  %vm2443_vm12 = vweird.f32 %v3270_v51 }
 0x3a2   : > { %v2435_v56 = vsel %vm2432_vm11, %v2434_v17, %v2430_v33  ;;  %3273 = vrcp.f32 %v2282_v48  ;;  %vm2444_vm14 = vmor %vm2442_vm13, %vm2443_vm12  ;;  %v2463_v41 = vand.u32 2147483648, %v2282_v48  ;;  %v2461_v38 = vand.u32 2147483647, %v2282_v48 }
 0x3a3   : > { %2537 = vst.msk [vmem:[%s4633_s14 + $0x48] sm:$0xff] %vm2527_vm3, %v2435_v56  ;;  %v2439_v18 = vsub.f32 1.0, %v2438_v29  ;;  %vm2457_vm0 = vweird.f32 %v2282_v48 }
 0x3a4   : > { %v2198_v25 = vpop.xlane.xlu1 %2197  ;;  %v2464_v44 = vor.u32 1.1754944e-38, %v2463_v41  ;;  %vm2462_vm4 = vcmp.eq.f32.partialorder %v2461_v38, 8.507059e+37 }
 0x3a5   : > { %v2440_v47 = vmul.f32 %v3270_v51, %v2439_v18  ;;  %v2220_v54 = vadd.f32 %v4622_v42, %v2198_v25 }
 0x3a7   : > { %v3272_v14 = vpop.eup %3271  ;;  %v2441_v26 = vadd.f32 %v3270_v51, %v2440_v47  ;;  %v3094_v36 = vmul.f32 -1.442695, %v2220_v54 }
 0x3a8   : > { %v3274_v20 = vpop.eup %3273  ;;  %v2283_v24 = vadd.f32 1.0, %v3272_v14 }
 0x3a9   : > { %v2445_v9 = vsel %vm2444_vm14, %v3270_v51, %v2441_v26  ;;  %v2453_v11 = vmul.f32 %v3274_v20, %v2282_v48  ;;  %3275 = vpow2.f32 %v3094_v36  ;;  %vm2458_vm1 = vweird.f32 %v3274_v20 }
 0x3aa   : > { %v2450_v34 = vsel %vm2447_vm15, %v2449_v37, %v2445_v9  ;;  %3277 = vrcp.f32 %v2283_v24  ;;  %vm2459_vm2 = vmor %vm2457_vm0, %vm2458_vm1  ;;  %v2478_v39 = vand.u32 2147483648, %v2283_v24  ;;  %v2476_v6 = vand.u32 2147483647, %v2283_v24 }
 0x3ab   : > { %2538 = vst.msk [vmem:[%s4633_s14 + $0x50] sm:$0xff] %vm2527_vm3, %v2450_v34  ;;  %v2454_v35 = vsub.f32 1.0, %v2453_v11  ;;  %vm2472_vm6 = vweird.f32 %v2283_v24 }
 0x3ac   : > { %v2200_v61 = vpop.xlane.xlu2 %2199  ;;  %v2479_v8 = vor.u32 1.1754944e-38, %v2478_v39  ;;  %vm2477_vm8 = vcmp.eq.f32.partialorder %v2476_v6, 8.507059e+37 }
 0x3ad   : > { %v2455_v0 = vmul.f32 %v3274_v20, %v2454_v35  ;;  %v2221_v32 = vadd.f32 %v4622_v42, %v2200_v61 }
 0x3af   : > { %v3276_v49 = vpop.eup %3275  ;;  %v2456_v28 = vadd.f32 %v3274_v20, %v2455_v0  ;;  %v3095_v16 = vmul.f32 -1.442695, %v2221_v32 }
 0x3b0   : > { %v3278_v40 = vpop.eup %3277  ;;  %v2284_v12 = vadd.f32 1.0, %v3276_v49 }
 0x3b1   : > { %v2460_v4 = vsel %vm2459_vm2, %v3274_v20, %v2456_v28  ;;  %v2468_v10 = vmul.f32 %v3278_v40, %v2283_v24  ;;  %3279 = vpow2.f32 %v3095_v16  ;;  %vm2473_vm5 = vweird.f32 %v3278_v40 }
 0x3b2   : > { %v2465_v3 = vsel %vm2462_vm4, %v2464_v44, %v2460_v4  ;;  %3281 = vrcp.f32 %v2284_v12  ;;  %vm2474_vm7 = vmor %vm2472_vm6, %vm2473_vm5  ;;  %v2493_v2 = vand.u32 2147483648, %v2284_v12  ;;  %v2491_v22 = vand.u32 2147483647, %v2284_v12 }
 0x3b3   : > { %2539 = vst.msk [vmem:[%s4633_s14 + $0x58] sm:$0xff] %vm2527_vm3, %v2465_v3  ;;  %v2469_v23 = vsub.f32 1.0, %v2468_v10  ;;  %vm2487_vm10 = vweird.f32 %v2284_v12 }
 0x3b4   : > { %v2202_v46 = vpop.xlane.xlu0 %2201  ;;  %v2494_v59 = vor.u32 1.1754944e-38, %v2493_v2  ;;  %vm2492_vm12 = vcmp.eq.f32.partialorder %v2491_v22, 8.507059e+37 }
 0x3b5   : > { %v2470_v43 = vmul.f32 %v3278_v40, %v2469_v23  ;;  %v2222_v53 = vadd.f32 %v4622_v42, %v2202_v46 }
 0x3b7   : > { %v3280_v45 = vpop.eup %3279  ;;  %v2471_v58 = vadd.f32 %v3278_v40, %v2470_v43  ;;  %v3096_v55 = vmul.f32 -1.442695, %v2222_v53 }
 0x3b8   : > { %v3282_v21 = vpop.eup %3281  ;;  %v2285_v19 = vadd.f32 1.0, %v3280_v45 }
 0x3b9   : > { %v2475_v7 = vsel %vm2474_vm7, %v3278_v40, %v2471_v58  ;;  %v2483_v60 = vmul.f32 %v3282_v21, %v2284_v12  ;;  %3283 = vpow2.f32 %v3096_v55  ;;  %vm2488_vm9 = vweird.f32 %v3282_v21 }
 0x3ba   : > { %v2480_v30 = vsel %vm2477_vm8, %v2479_v8, %v2475_v7  ;;  %3285 = vrcp.f32 %v2285_v19  ;;  %vm2489_vm11 = vmor %vm2487_vm10, %vm2488_vm9  ;;  %v2508_v51 = vand.u32 2147483648, %v2285_v19  ;;  %v2506_v48 = vand.u32 2147483647, %v2285_v19 }
 0x3bb   : > { %2540 = vst.msk [vmem:[%s4633_s14 + $0x60] sm:$0xff] %vm2527_vm3, %v2480_v30  ;;  %v2484_v5 = vsub.f32 1.0, %v2483_v60  ;;  %vm2502_vm14 = vweird.f32 %v2285_v19 }
 0x3bc   : > { %v2509_v56 = vor.u32 1.1754944e-38, %v2508_v51  ;;  %vm2507_vm1 = vcmp.eq.f32.partialorder %v2506_v48, 8.507059e+37 }
 0x3bd   : > { %v2485_v42 = vmul.f32 %v3282_v21, %v2484_v5 }
 0x3bf   : > { %v3284_v13 = vpop.eup %3283  ;;  %v2486_v31 = vadd.f32 %v3282_v21, %v2485_v42 }
 0x3c0   : > { %v3286_v62 = vpop.eup %3285  ;;  %v2286_v27 = vadd.f32 1.0, %v3284_v13 }
 0x3c1   : > { %v2490_v57 = vsel %vm2489_vm11, %v3282_v21, %v2486_v31  ;;  %v2498_v63 = vmul.f32 %v3286_v62, %v2285_v19  ;;  %vm2503_vm13 = vweird.f32 %v3286_v62 }
 0x3c2   : > { %v2495_v15 = vsel %vm2492_vm12, %v2494_v59, %v2490_v57  ;;  %3287 = vrcp.f32 %v2286_v27  ;;  %vm2504_vm15 = vmor %vm2502_vm14, %vm2503_vm13  ;;  %v2523_v1 = vand.u32 2147483648, %v2286_v27  ;;  %v2521_v14 = vand.u32 2147483647, %v2286_v27 }
 0x3c3   : > { %2541 = vst.msk [vmem:[%s4633_s14 + $0x68] sm:$0xff] %vm2527_vm3, %v2495_v15  ;;  %v2499_v52 = vsub.f32 1.0, %v2498_v63  ;;  %vm2517_vm2 = vweird.f32 %v2286_v27 }
 0x3c4   : > { %v2524_v36 = vor.u32 1.1754944e-38, %v2523_v1  ;;  %vm2522_vm5 = vcmp.eq.f32.partialorder %v2521_v14, 8.507059e+37 }
 0x3c5   : > { %v2500_v17 = vmul.f32 %v3286_v62, %v2499_v52 }
 0x3c7   : > { %v2501_v33 = vadd.f32 %v3286_v62, %v2500_v17 }
 0x3c8   : > { %v3288_v29 = vpop.eup %3287 }
 0x3c9   : > { %v2505_v18 = vsel %vm2504_vm15, %v3286_v62, %v2501_v33  ;;  %v2513_v50 = vmul.f32 %v3288_v29, %v2286_v27  ;;  %vm2518_vm0 = vweird.f32 %v3288_v29 }
 0x3ca   : > { %v2510_v25 = vsel %vm2507_vm1, %v2509_v56, %v2505_v18  ;;  %vm2519_vm4 = vmor %vm2517_vm2, %vm2518_vm0 }
 0x3cb   : > { %2542 = vst.msk [vmem:[%s4633_s14 + $0x70] sm:$0xff] %vm2527_vm3, %v2510_v25  ;;  %v2514_v47 = vsub.f32 1.0, %v2513_v50 }
 0x3cd   : > { %v2515_v54 = vmul.f32 %v3288_v29, %v2514_v47 }
 0x3cf   : > { %v2516_v26 = vadd.f32 %v3288_v29, %v2515_v54 }
 0x3d1   : > { %v2520_v20 = vsel %vm2519_vm4, %v3288_v29, %v2516_v26 }
 0x3d2   : > { %v2525_v37 = vsel %vm2522_vm5, %v2524_v36, %v2520_v20 }
 0x3d3   : > { %2543 = vst.msk [vmem:[%s4633_s14 + $0x78] sm:$0xff] %vm2527_vm3, %v2525_v37 }
 0x3d4 PF: > { %s19_s26 = sadd.s32 1, %s3296_s26  }
 0x3d5   : > { %p16_p4 = scmp.ge.s32.totalorder %s19_s26, 4  }
 0x3d7   :  { %18 = sbr.rel (!%p16_p4) target bundleno = 3 (0x3), region = 78 }

</bundles_post_ra>
